<compile_context>
chip_gen: v7x
topology: tpu7x:2x2x1
jax: 0.10.0
libtpu: 0.0.40
codegen_flags: <defaults>
</compile_context>

<pallas_src>
import functools
import math

import jax
import jax.numpy as jnp
import numpy as np
from jax.experimental import pallas as pl
from jax.experimental.pallas import tpu as pltpu

_LN_EPS = 1e-5


# ----------------------------------------------------------------------------
# helpers
# ----------------------------------------------------------------------------
def _replicated_spec(arr):
    """Whole-array block, same block for every grid step (1-D grid)."""
    nd = arr.ndim
    return pl.BlockSpec(arr.shape, lambda i, _nd=nd: (0,) * _nd)


def _parallel_params():
    return pltpu.CompilerParams(dimension_semantics=("parallel",))


def _layernorm(r, gamma, beta, eps):
    mu = jnp.mean(r, axis=-1, keepdims=True)
    rc = r - mu
    var = jnp.mean(rc * rc, axis=-1, keepdims=True)
    return rc * jax.lax.rsqrt(var + eps) * gamma + beta


def _multi_head_attention(q, k, v, wo_f32, nhead):
    """q/k/v: (S, D) f32, wo: (D, D) f32 -> (S, D) f32 (pre-bias, pre-residual).

    Heads are handled with a small unrolled loop over lane slices; the head
    concat is folded into the output projection as a sum of partial matmuls,
    so no reshape/transpose of activations is ever needed.
    """
    S, D = q.shape
    Dh = D // nhead
    scale = 1.0 / math.sqrt(Dh)
    out = jnp.zeros((S, D), jnp.float32)
    for h in range(nhead):
        sl = slice(h * Dh, (h + 1) * Dh)
        qh = q[:, sl].astype(jnp.bfloat16)
        kh = k[:, sl].astype(jnp.bfloat16)
        vh = v[:, sl].astype(jnp.bfloat16)
        # scores = q @ k^T  (contraction over head dim)
        s = jax.lax.dot_general(qh, kh, (((1,), (1,)), ((), ())),
                                preferred_element_type=jnp.float32) * scale
        s = s - jnp.max(s, axis=-1, keepdims=True)
        p = jnp.exp(s)
        p = p * pl.reciprocal(jnp.sum(p, axis=-1, keepdims=True), approx=True)
        ctx = jnp.dot(p.astype(jnp.bfloat16), vh,
                      preferred_element_type=jnp.float32)           # (S, Dh)
        wo_h = wo_f32[sl, :].astype(jnp.bfloat16)                   # (Dh, D)
        out = out + jnp.dot(ctx.astype(jnp.bfloat16), wo_h,
                            preferred_element_type=jnp.float32)
    return out


# ----------------------------------------------------------------------------
# Pallas kernels (one per fused sub-layer)
# ----------------------------------------------------------------------------
def _inproj_pe_kernel(x_ref, w_ref, b_ref, pe_ref, o_ref):
    y = jnp.dot(x_ref[...].astype(jnp.bfloat16), w_ref[...].astype(jnp.bfloat16),
                preferred_element_type=jnp.float32)
    o_ref[...] = (y + b_ref[...] + pe_ref[...]).astype(o_ref.dtype)


def _self_attn_ln_kernel(x_ref, wqkv_ref, bqkv_ref, wo_ref, bo_ref,
                         g_ref, beta_ref, o_ref, *, nhead, eps):
    x = x_ref[...].astype(jnp.float32)                               # (S, D)
    D = x.shape[-1]
    qkv = jnp.dot(x.astype(jnp.bfloat16), wqkv_ref[...].astype(jnp.bfloat16),
                  preferred_element_type=jnp.float32) + bqkv_ref[...]
    q, k, v = qkv[:, :D], qkv[:, D:2 * D], qkv[:, 2 * D:]
    attn = _multi_head_attention(q, k, v, wo_ref[...], nhead) + bo_ref[...]
    r = x + attn
    o_ref[...] = _layernorm(r, g_ref[...], beta_ref[...], eps).astype(o_ref.dtype)


def _cross_attn_ln_kernel(xq_ref, xkv_ref, wq_ref, bq_ref, wkv_ref, bkv_ref,
                          wo_ref, bo_ref, g_ref, beta_ref, o_ref, *, nhead, eps):
    xq = xq_ref[...].astype(jnp.float32)                             # (S, D)
    xkv = xkv_ref[...].astype(jnp.float32)                           # (S, D)
    D = xq.shape[-1]
    q = jnp.dot(xq.astype(jnp.bfloat16), wq_ref[...].astype(jnp.bfloat16),
                preferred_element_type=jnp.float32) + bq_ref[...]
    kv = jnp.dot(xkv.astype(jnp.bfloat16), wkv_ref[...].astype(jnp.bfloat16),
                 preferred_element_type=jnp.float32) + bkv_ref[...]
    k, v = kv[:, :D], kv[:, D:]
    attn = _multi_head_attention(q, k, v, wo_ref[...], nhead) + bo_ref[...]
    r = xq + attn
    o_ref[...] = _layernorm(r, g_ref[...], beta_ref[...], eps).astype(o_ref.dtype)


def _ffn_ln_kernel(x_ref, w1_ref, b1_ref, w2_ref, b2_ref, g_ref, beta_ref,
                   o_ref, *, eps):
    x = x_ref[...].astype(jnp.float32)
    h = jnp.dot(x.astype(jnp.bfloat16), w1_ref[...].astype(jnp.bfloat16),
                preferred_element_type=jnp.float32) + b1_ref[...]
    h = jnp.maximum(h, 0.0)
    y = jnp.dot(h.astype(jnp.bfloat16), w2_ref[...].astype(jnp.bfloat16),
                preferred_element_type=jnp.float32) + b2_ref[...]
    r = x + y
    o_ref[...] = _layernorm(r, g_ref[...], beta_ref[...], eps).astype(o_ref.dtype)


def _outproj_kernel(x_ref, w_ref, b_ref, o_ref):
    y = jnp.dot(x_ref[...].astype(jnp.bfloat16), w_ref[...].astype(jnp.bfloat16),
                preferred_element_type=jnp.float32) + b_ref[...]
    o_ref[...] = y.astype(o_ref.dtype)


# ----------------------------------------------------------------------------
# pallas_call wrappers
# ----------------------------------------------------------------------------
def input_projection_pe(x2d, w, b, pe, *, seq_len):
    """x2d: (B*S, F) -> (B*S, D) with positional encoding added per row."""
    N, F = x2d.shape
    D = w.shape[1]
    B = N // seq_len
    row_in = pl.BlockSpec((seq_len, F), lambda i: (i, 0))
    row_out = pl.BlockSpec((seq_len, D), lambda i: (i, 0))
    return pl.pallas_call(
        _inproj_pe_kernel,
        out_shape=jax.ShapeDtypeStruct((N, D), jnp.float32),
        grid=(B,),
        in_specs=[row_in, _replicated_spec(w), _replicated_spec(b),
                  _replicated_spec(pe)],
        out_specs=row_out,
        compiler_params=_parallel_params(),
    )(x2d, w, b, pe)


def self_attention_block(x, wqkv, bqkv, wo, bo, gamma, beta, *, nhead, seq_len,
                         eps=_LN_EPS):
    N, D = x.shape
    B = N // seq_len
    row = pl.BlockSpec((seq_len, D), lambda i: (i, 0))
    return pl.pallas_call(
        functools.partial(_self_attn_ln_kernel, nhead=nhead, eps=eps),
        out_shape=jax.ShapeDtypeStruct((N, D), x.dtype),
        grid=(B,),
        in_specs=[row] + [_replicated_spec(a)
                          for a in (wqkv, bqkv, wo, bo, gamma, beta)],
        out_specs=row,
        compiler_params=_parallel_params(),
    )(x, wqkv, bqkv, wo, bo, gamma, beta)


def cross_attention_block(xq, xkv, wq, bq, wkv, bkv, wo, bo, gamma, beta, *,
                          nhead, seq_len, eps=_LN_EPS):
    N, D = xq.shape
    B = N // seq_len
    row = pl.BlockSpec((seq_len, D), lambda i: (i, 0))
    return pl.pallas_call(
        functools.partial(_cross_attn_ln_kernel, nhead=nhead, eps=eps),
        out_shape=jax.ShapeDtypeStruct((N, D), xq.dtype),
        grid=(B,),
        in_specs=[row, row] + [_replicated_spec(a)
                               for a in (wq, bq, wkv, bkv, wo, bo, gamma, beta)],
        out_specs=row,
        compiler_params=_parallel_params(),
    )(xq, xkv, wq, bq, wkv, bkv, wo, bo, gamma, beta)


def ffn_block(x, w1, b1, w2, b2, gamma, beta, *, rows_per_tile, eps=_LN_EPS):
    N, D = x.shape
    T = N // rows_per_tile
    row = pl.BlockSpec((rows_per_tile, D), lambda i: (i, 0))
    return pl.pallas_call(
        functools.partial(_ffn_ln_kernel, eps=eps),
        out_shape=jax.ShapeDtypeStruct((N, D), x.dtype),
        grid=(T,),
        in_specs=[row] + [_replicated_spec(a)
                          for a in (w1, b1, w2, b2, gamma, beta)],
        out_specs=row,
        compiler_params=_parallel_params(),
    )(x, w1, b1, w2, b2, gamma, beta)


def output_projection(x, w, b, *, rows_per_tile):
    N, D = x.shape
    F = w.shape[1]
    T = N // rows_per_tile
    row_in = pl.BlockSpec((rows_per_tile, D), lambda i: (i, 0))
    row_out = pl.BlockSpec((rows_per_tile, F), lambda i: (i, 0))
    return pl.pallas_call(
        _outproj_kernel,
        out_shape=jax.ShapeDtypeStruct((N, F), x.dtype),
        grid=(T,),
        in_specs=[row_in, _replicated_spec(w), _replicated_spec(b)],
        out_specs=row_out,
        compiler_params=_parallel_params(),
    )(x, w, b)


# ----------------------------------------------------------------------------
# Model composition
# ----------------------------------------------------------------------------
def encoder_layer(x, p, nhead, seq_len):
    sa = p["sa"]
    x = self_attention_block(x, sa["wqkv"], sa["bqkv"], sa["wo"], sa["bo"],
                             p["ln1_g"], p["ln1_b"], nhead=nhead, seq_len=seq_len)
    x = ffn_block(x, p["ff1_w"], p["ff1_b"], p["ff2_w"], p["ff2_b"],
                  p["ln2_g"], p["ln2_b"], rows_per_tile=seq_len)
    return x


def decoder_layer(x, mem, p, nhead, seq_len):
    sa, ca = p["sa"], p["ca"]
    x = self_attention_block(x, sa["wqkv"], sa["bqkv"], sa["wo"], sa["bo"],
                             p["ln1_g"], p["ln1_b"], nhead=nhead, seq_len=seq_len)
    x = cross_attention_block(x, mem, ca["wq"], ca["bq"], ca["wkv"], ca["bkv"],
                              ca["wo"], ca["bo"], p["ln2_g"], p["ln2_b"],
                              nhead=nhead, seq_len=seq_len)
    x = ffn_block(x, p["ff1_w"], p["ff1_b"], p["ff2_w"], p["ff2_b"],
                  p["ln3_g"], p["ln3_b"], rows_per_tile=seq_len)
    return x


def transformer_ae_forward(x, params, cfg):
    """x: (B, S, n_features) -> (B, S, n_features)."""
    B, S, F = x.shape
    D = cfg["d_model"]
    H = cfg["nhead"]

    # input projection + positional encoding (rows ordered b-major, s-minor:
    # equivalent to the PyTorch permute(1,0,2) seq-first layout per batch).
    h = input_projection_pe(x.reshape(B * S, F), params["in_w"],
                            params["in_b"], params["pe"][:S], seq_len=S)

    # encoder
    mem = h
    for lp in params["enc"]:
        mem = encoder_layer(mem, lp, H, S)

    # decoder target: zeros with start token at sequence position 0
    start = jnp.broadcast_to(params["start_token"].reshape(1, 1, D), (B, 1, D))
    tgt = jnp.concatenate(
        [start, jnp.zeros((B, S - 1, D), jnp.float32)], axis=1).reshape(B * S, D)

    out = tgt
    for lp in params["dec"]:
        out = decoder_layer(out, mem, lp, H, S)

    # output projection back to feature space
    y = output_projection(out, params["out_w"], params["out_b"], rows_per_tile=S)
    return y.reshape(B, S, F)


# ----------------------------------------------------------------------------
# Deterministic parameter init (synthetic; shapes match the nn.Module __init__)
# ----------------------------------------------------------------------------
def make_positional_encoding(max_len, d_model):
    position = np.arange(max_len, dtype=np.float32)[:, None]
    div_term = np.exp(np.arange(0, d_model, 2, dtype=np.float32)
                      * (-math.log(10000.0) / d_model))
    pe = np.zeros((max_len, d_model), np.float32)
    pe[:, 0::2] = np.sin(position * div_term)
    pe[:, 1::2] = np.cos(position * div_term)
    return jnp.asarray(pe)                              # (max_len, d_model)


def init_params(key, cfg):
    F, D, H, L, FF, W = (cfg["n_features"], cfg["d_model"], cfg["nhead"],
                         cfg["num_layers"], cfg["dim_feedforward"],
                         cfg["window_size"])
    keys = iter(jax.random.split(key, 1024))

    def lin(din, dout):
        w = jax.random.normal(next(keys), (din, dout), jnp.float32) / np.sqrt(din)
        b = (jax.random.normal(next(keys), (dout,), jnp.float32) * 0.01
             ).reshape(1, dout)
        return w, b

    def mha_self_params():
        wq, bq = lin(D, D)
        wk, bk = lin(D, D)
        wv, bv = lin(D, D)
        wo, bo = lin(D, D)
        return dict(wqkv=jnp.concatenate([wq, wk, wv], axis=1),
                    bqkv=jnp.concatenate([bq, bk, bv], axis=1),
                    wo=wo, bo=bo)

    def mha_cross_params():
        wq, bq = lin(D, D)
        wk, bk = lin(D, D)
        wv, bv = lin(D, D)
        wo, bo = lin(D, D)
        return dict(wq=wq, bq=bq,
                    wkv=jnp.concatenate([wk, wv], axis=1),
                    bkv=jnp.concatenate([bk, bv], axis=1),
                    wo=wo, bo=bo)

    ones = lambda: jnp.ones((1, D), jnp.float32)
    zeros = lambda: jnp.zeros((1, D), jnp.float32)

    def enc_layer_params():
        ff1_w, ff1_b = lin(D, FF)
        ff2_w, ff2_b = lin(FF, D)
        return dict(sa=mha_self_params(),
                    ln1_g=ones(), ln1_b=zeros(),
                    ln2_g=ones(), ln2_b=zeros(),
                    ff1_w=ff1_w, ff1_b=ff1_b, ff2_w=ff2_w, ff2_b=ff2_b)

    def dec_layer_params():
        ff1_w, ff1_b = lin(D, FF)
        ff2_w, ff2_b = lin(FF, D)
        return dict(sa=mha_self_params(), ca=mha_cross_params(),
                    ln1_g=ones(), ln1_b=zeros(),
                    ln2_g=ones(), ln2_b=zeros(),
                    ln3_g=ones(), ln3_b=zeros(),
                    ff1_w=ff1_w, ff1_b=ff1_b, ff2_w=ff2_w, ff2_b=ff2_b)

    in_w, in_b = lin(F, D)
    out_w, out_b = lin(D, F)
    return dict(
        in_w=in_w, in_b=in_b,
        out_w=out_w, out_b=out_b,
        pe=make_positional_encoding(W, D),
        start_token=jax.random.normal(next(keys), (1, 1, D), jnp.float32),
        enc=[enc_layer_params() for _ in range(L)],
        dec=[dec_layer_params() for _ in range(L)],
    )


# ----------------------------------------------------------------------------
if __name__ == "__main__":
    cfg = dict(n_features=4, window_size=16, d_model=32, nhead=4,
               num_layers=2, dim_feedforward=64)
    key = jax.random.PRNGKey(0)
    k_param, k_data = jax.random.split(key)

    params = init_params(k_param, cfg)
    x = jax.random.normal(k_data, (2, cfg["window_size"], cfg["n_features"]),
                          jnp.float32)

    fwd = jax.jit(functools.partial(transformer_ae_forward, cfg=cfg))
    out = fwd(x, params)
    out = jax.block_until_ready(out)

    assert out.shape == (2, cfg["window_size"], cfg["n_features"]), out.shape
    assert bool(jnp.all(jnp.isfinite(out)))
    print("KERNEL_OK")
</pallas_src>

<mosaic_0001>
module attributes {stable_mosaic.version = 11 : i64} {
  func.func @_inproj_pe_kernel(%arg0: i32, %arg1: memref<16x4xf32, #tpu.memory_space<vmem>>, %arg2: memref<4x32xf32, #tpu.memory_space<vmem>>, %arg3: memref<1x32xf32, #tpu.memory_space<vmem>>, %arg4: memref<16x32xf32, #tpu.memory_space<vmem>>, %arg5: memref<16x32xf32, #tpu.memory_space<vmem>>) attributes {dimension_semantics = [#tpu.dimension_semantics<parallel>], iteration_bounds = array<i64: 2>, scalar_prefetch = 0 : i64, scratch_operands = 0 : i64, tpu.core_type = #tpu.core_type<tc>, window_params = [{transform_indices = @transform_0, window_bounds = array<i64: 16, 4>}, {pipeline_mode = #tpu.pipeline_mode<synchronous>, transform_indices = @transform_1, window_bounds = array<i64: 4, 32>}, {pipeline_mode = #tpu.pipeline_mode<synchronous>, transform_indices = @transform_2, window_bounds = array<i64: 1, 32>}, {pipeline_mode = #tpu.pipeline_mode<synchronous>, transform_indices = @transform_3, window_bounds = array<i64: 16, 32>}, {transform_indices = @transform_4, window_bounds = array<i64: 16, 32>}]} {
    %c0 = arith.constant 0 : index
    %c0_0 = arith.constant 0 : index
    %0 = vector.load %arg1[%c0, %c0_0] : memref<16x4xf32, #tpu.memory_space<vmem>>, vector<16x4xf32>
    %1 = arith.truncf %0 : vector<16x4xf32> to vector<16x4xbf16>
    %c0_1 = arith.constant 0 : index
    %c0_2 = arith.constant 0 : index
    %2 = vector.load %arg2[%c0_1, %c0_2] : memref<4x32xf32, #tpu.memory_space<vmem>>, vector<4x32xf32>
    %3 = arith.truncf %2 : vector<4x32xf32> to vector<4x32xbf16>
    %cst = arith.constant dense<0.000000e+00> : vector<16x32xf32>
    %4 = tpu.matmul %1, %3, %cst {dimension_numbers = #tpu.dot_dimension_numbers<[1], [0], [0], [1], [0, 0, 1, 1], [], []>} : vector<16x4xbf16>, vector<4x32xbf16>, vector<16x32xf32> -> vector<16x32xf32>
    %c0_3 = arith.constant 0 : index
    %c0_4 = arith.constant 0 : index
    %5 = vector.load %arg3[%c0_3, %c0_4] : memref<1x32xf32, #tpu.memory_space<vmem>>, vector<1x32xf32>
    %6 = vector.broadcast %5 : vector<1x32xf32> to vector<16x32xf32>
    %7 = arith.addf %4, %6 : vector<16x32xf32>
    %c0_5 = arith.constant 0 : index
    %c0_6 = arith.constant 0 : index
    %8 = vector.load %arg4[%c0_5, %c0_6] : memref<16x32xf32, #tpu.memory_space<vmem>>, vector<16x32xf32>
    %9 = arith.addf %7, %8 : vector<16x32xf32>
    %c0_7 = arith.constant 0 : index
    %c0_8 = arith.constant 0 : index
    %10 = vector.load %arg5[%c0_7, %c0_8] : memref<16x32xf32, #tpu.memory_space<vmem>>, vector<16x32xf32>
    tpu.vector_store %arg5[%c0_7, %c0_8], %9 {strides = array<i32>} : memref<16x32xf32, #tpu.memory_space<vmem>>, vector<16x32xf32>,
    return
  }
  func.func @transform_0(%arg0: i32) -> (i32, i32) {
    %c0_i32 = arith.constant 0 : i32
    %c0_i32_0 = arith.constant 0 : i32
    return %arg0, %c0_i32 : i32, i32
  }
  func.func @transform_1(%arg0: i32) -> (i32, i32) {
    %c0_i32 = arith.constant 0 : i32
    %c0_i32_0 = arith.constant 0 : i32
    %c0_i32_1 = arith.constant 0 : i32
    return %c0_i32, %c0_i32_0 : i32, i32
  }
  func.func @transform_2(%arg0: i32) -> (i32, i32) {
    %c0_i32 = arith.constant 0 : i32
    %c0_i32_0 = arith.constant 0 : i32
    %c0_i32_1 = arith.constant 0 : i32
    return %c0_i32, %c0_i32_0 : i32, i32
  }
  func.func @transform_3(%arg0: i32) -> (i32, i32) {
    %c0_i32 = arith.constant 0 : i32
    %c0_i32_0 = arith.constant 0 : i32
    %c0_i32_1 = arith.constant 0 : i32
    return %c0_i32, %c0_i32_0 : i32, i32
  }
  func.func @transform_4(%arg0: i32) -> (i32, i32) {
    %c0_i32 = arith.constant 0 : i32
    %c0_i32_0 = arith.constant 0 : i32
    return %arg0, %c0_i32 : i32, i32
  }
}

module attributes {stable_mosaic.version = 11 : i64} {
  func.func @_self_attn_ln_kernel(%arg0: i32, %arg1: memref<16x32xf32, #tpu.memory_space<vmem>>, %arg2: memref<32x96xf32, #tpu.memory_space<vmem>>, %arg3: memref<1x96xf32, #tpu.memory_space<vmem>>, %arg4: memref<32x32xf32, #tpu.memory_space<vmem>>, %arg5: memref<1x32xf32, #tpu.memory_space<vmem>>, %arg6: memref<1x32xf32, #tpu.memory_space<vmem>>, %arg7: memref<1x32xf32, #tpu.memory_space<vmem>>, %arg8: memref<16x32xf32, #tpu.memory_space<vmem>>) attributes {dimension_semantics = [#tpu.dimension_semantics<parallel>], iteration_bounds = array<i64: 2>, scalar_prefetch = 0 : i64, scratch_operands = 0 : i64, tpu.core_type = #tpu.core_type<tc>, window_params = [{transform_indices = @transform_0, window_bounds = array<i64: 16, 32>}, {pipeline_mode = #tpu.pipeline_mode<synchronous>, transform_indices = @transform_1, window_bounds = array<i64: 32, 96>}, {pipeline_mode = #tpu.pipeline_mode<synchronous>, transform_indices = @transform_2, window_bounds = array<i64: 1, 96>}, {pipeline_mode = #tpu.pipeline_mode<synchronous>, transform_indices = @transform_3, window_bounds = array<i64: 32, 32>}, {pipeline_mode = #tpu.pipeline_mode<synchronous>, transform_indices = @transform_4, window_bounds = array<i64: 1, 32>}, {pipeline_mode = #tpu.pipeline_mode<synchronous>, transform_indices = @transform_5, window_bounds = array<i64: 1, 32>}, {pipeline_mode = #tpu.pipeline_mode<synchronous>, transform_indices = @transform_6, window_bounds = array<i64: 1, 32>}, {transform_indices = @transform_7, window_bounds = array<i64: 16, 32>}]} {
    %c0 = arith.constant 0 : index
    %c0_0 = arith.constant 0 : index
    %0 = vector.load %arg1[%c0, %c0_0] : memref<16x32xf32, #tpu.memory_space<vmem>>, vector<16x32xf32>
    %1 = arith.truncf %0 : vector<16x32xf32> to vector<16x32xbf16>
    %c0_1 = arith.constant 0 : index
    %c0_2 = arith.constant 0 : index
    %2 = vector.load %arg2[%c0_1, %c0_2] : memref<32x96xf32, #tpu.memory_space<vmem>>, vector<32x96xf32>
    %3 = arith.truncf %2 : vector<32x96xf32> to vector<32x96xbf16>
    %cst = arith.constant dense<0.000000e+00> : vector<16x96xf32>
    %4 = tpu.matmul %1, %3, %cst {dimension_numbers = #tpu.dot_dimension_numbers<[1], [0], [0], [1], [0, 0, 1, 1], [], []>} : vector<16x32xbf16>, vector<32x96xbf16>, vector<16x96xf32> -> vector<16x96xf32>
    %c0_3 = arith.constant 0 : index
    %c0_4 = arith.constant 0 : index
    %5 = vector.load %arg3[%c0_3, %c0_4] : memref<1x96xf32, #tpu.memory_space<vmem>>, vector<1x96xf32>
    %6 = vector.broadcast %5 : vector<1x96xf32> to vector<16x96xf32>
    %7 = arith.addf %4, %6 : vector<16x96xf32>
    %8 = vector.extract_strided_slice %7 {offsets = [0, 0], sizes = [16, 32], strides = [1, 1]} : vector<16x96xf32> to vector<16x32xf32>
    %9 = vector.extract_strided_slice %7 {offsets = [0, 32], sizes = [16, 32], strides = [1, 1]} : vector<16x96xf32> to vector<16x32xf32>
    %10 = vector.extract_strided_slice %7 {offsets = [0, 64], sizes = [16, 32], strides = [1, 1]} : vector<16x96xf32> to vector<16x32xf32>
    %c0_5 = arith.constant 0 : index
    %c0_6 = arith.constant 0 : index
    %11 = vector.load %arg4[%c0_5, %c0_6] : memref<32x32xf32, #tpu.memory_space<vmem>>, vector<32x32xf32>
    %cst_7 = arith.constant 0.000000e+00 : f32
    %12 = vector.broadcast %cst_7 : f32 to vector<16x32xf32>
    %13 = vector.extract_strided_slice %8 {offsets = [0, 0], sizes = [16, 8], strides = [1, 1]} : vector<16x32xf32> to vector<16x8xf32>
    %14 = arith.truncf %13 : vector<16x8xf32> to vector<16x8xbf16>
    %15 = vector.extract_strided_slice %9 {offsets = [0, 0], sizes = [16, 8], strides = [1, 1]} : vector<16x32xf32> to vector<16x8xf32>
    %16 = arith.truncf %15 : vector<16x8xf32> to vector<16x8xbf16>
    %17 = vector.extract_strided_slice %10 {offsets = [0, 0], sizes = [16, 8], strides = [1, 1]} : vector<16x32xf32> to vector<16x8xf32>
    %18 = arith.truncf %17 : vector<16x8xf32> to vector<16x8xbf16>
    %cst_8 = arith.constant dense<0.000000e+00> : vector<16x16xf32>
    %19 = tpu.matmul %14, %16, %cst_8 {dimension_numbers = #tpu.dot_dimension_numbers<[1], [1], [0], [0], [0, 0, 1, 0], [], []>} : vector<16x8xbf16>, vector<16x8xbf16>, vector<16x16xf32> -> vector<16x16xf32>
    %cst_9 = arith.constant 0.353553385 : f32
    %20 = vector.broadcast %cst_9 : f32 to vector<16x16xf32>
    %21 = arith.mulf %19, %20 : vector<16x16xf32>
    %cst_10 = arith.constant dense<0xFF800000> : vector<16xf32>
    %22 = vector.multi_reduction <maximumf>, %21, %cst_10 [1] : vector<16x16xf32> to vector<16xf32>
    %23 = vector.shape_cast %22 : vector<16xf32> to vector<16x1xf32>
    %24 = vector.broadcast %23 : vector<16x1xf32> to vector<16x16xf32>
    %25 = arith.subf %21, %24 : vector<16x16xf32>
    %26 = math.exp %25 : vector<16x16xf32>
    %cst_11 = arith.constant dense<0.000000e+00> : vector<16xf32>
    %27 = vector.multi_reduction <add>, %26, %cst_11 [1] : vector<16x16xf32> to vector<16xf32>
    %28 = vector.shape_cast %27 : vector<16xf32> to vector<16x1xf32>
    %29 = tpu.reciprocal %28 {approx = true} : vector<16x1xf32> -> vector<16x1xf32>
    %30 = vector.broadcast %29 : vector<16x1xf32> to vector<16x16xf32>
    %31 = arith.mulf %26, %30 : vector<16x16xf32>
    %32 = arith.truncf %31 : vector<16x16xf32> to vector<16x16xbf16>
    %cst_12 = arith.constant dense<0.000000e+00> : vector<16x8xf32>
    %33 = tpu.matmul %32, %18, %cst_12 {dimension_numbers = #tpu.dot_dimension_numbers<[1], [0], [0], [1], [0, 0, 1, 1], [], []>} : vector<16x16xbf16>, vector<16x8xbf16>, vector<16x8xf32> -> vector<16x8xf32>
    %34 = vector.extract_strided_slice %11 {offsets = [0, 0], sizes = [8, 32], strides = [1, 1]} : vector<32x32xf32> to vector<8x32xf32>
    %35 = arith.truncf %34 : vector<8x32xf32> to vector<8x32xbf16>
    %36 = arith.truncf %33 : vector<16x8xf32> to vector<16x8xbf16>
    %cst_13 = arith.constant dense<0.000000e+00> : vector<16x32xf32>
    %37 = tpu.matmul %36, %35, %cst_13 {dimension_numbers = #tpu.dot_dimension_numbers<[1], [0], [0], [1], [0, 0, 1, 1], [], []>} : vector<16x8xbf16>, vector<8x32xbf16>, vector<16x32xf32> -> vector<16x32xf32>
    %38 = arith.addf %12, %37 : vector<16x32xf32>
    %39 = vector.extract_strided_slice %8 {offsets = [0, 8], sizes = [16, 8], strides = [1, 1]} : vector<16x32xf32> to vector<16x8xf32>
    %40 = arith.truncf %39 : vector<16x8xf32> to vector<16x8xbf16>
    %41 = vector.extract_strided_slice %9 {offsets = [0, 8], sizes = [16, 8], strides = [1, 1]} : vector<16x32xf32> to vector<16x8xf32>
    %42 = arith.truncf %41 : vector<16x8xf32> to vector<16x8xbf16>
    %43 = vector.extract_strided_slice %10 {offsets = [0, 8], sizes = [16, 8], strides = [1, 1]} : vector<16x32xf32> to vector<16x8xf32>
    %44 = arith.truncf %43 : vector<16x8xf32> to vector<16x8xbf16>
    %cst_14 = arith.constant dense<0.000000e+00> : vector<16x16xf32>
    %45 = tpu.matmul %40, %42, %cst_14 {dimension_numbers = #tpu.dot_dimension_numbers<[1], [1], [0], [0], [0, 0, 1, 0], [], []>} : vector<16x8xbf16>, vector<16x8xbf16>, vector<16x16xf32> -> vector<16x16xf32>
    %cst_15 = arith.constant 0.353553385 : f32
    %46 = vector.broadcast %cst_15 : f32 to vector<16x16xf32>
    %47 = arith.mulf %45, %46 : vector<16x16xf32>
    %cst_16 = arith.constant dense<0xFF800000> : vector<16xf32>
    %48 = vector.multi_reduction <maximumf>, %47, %cst_16 [1] : vector<16x16xf32> to vector<16xf32>
    %49 = vector.shape_cast %48 : vector<16xf32> to vector<16x1xf32>
    %50 = vector.broadcast %49 : vector<16x1xf32> to vector<16x16xf32>
    %51 = arith.subf %47, %50 : vector<16x16xf32>
    %52 = math.exp %51 : vector<16x16xf32>
    %cst_17 = arith.constant dense<0.000000e+00> : vector<16xf32>
    %53 = vector.multi_reduction <add>, %52, %cst_17 [1] : vector<16x16xf32> to vector<16xf32>
    %54 = vector.shape_cast %53 : vector<16xf32> to vector<16x1xf32>
    %55 = tpu.reciprocal %54 {approx = true} : vector<16x1xf32> -> vector<16x1xf32>
    %56 = vector.broadcast %55 : vector<16x1xf32> to vector<16x16xf32>
    %57 = arith.mulf %52, %56 : vector<16x16xf32>
    %58 = arith.truncf %57 : vector<16x16xf32> to vector<16x16xbf16>
    %cst_18 = arith.constant dense<0.000000e+00> : vector<16x8xf32>
    %59 = tpu.matmul %58, %44, %cst_18 {dimension_numbers = #tpu.dot_dimension_numbers<[1], [0], [0], [1], [0, 0, 1, 1], [], []>} : vector<16x16xbf16>, vector<16x8xbf16>, vector<16x8xf32> -> vector<16x8xf32>
    %60 = vector.extract_strided_slice %11 {offsets = [8, 0], sizes = [8, 32], strides = [1, 1]} : vector<32x32xf32> to vector<8x32xf32>
    %61 = arith.truncf %60 : vector<8x32xf32> to vector<8x32xbf16>
    %62 = arith.truncf %59 : vector<16x8xf32> to vector<16x8xbf16>
    %cst_19 = arith.constant dense<0.000000e+00> : vector<16x32xf32>
    %63 = tpu.matmul %62, %61, %cst_19 {dimension_numbers = #tpu.dot_dimension_numbers<[1], [0], [0], [1], [0, 0, 1, 1], [], []>} : vector<16x8xbf16>, vector<8x32xbf16>, vector<16x32xf32> -> vector<16x32xf32>
    %64 = arith.addf %38, %63 : vector<16x32xf32>
    %65 = vector.extract_strided_slice %8 {offsets = [0, 16], sizes = [16, 8], strides = [1, 1]} : vector<16x32xf32> to vector<16x8xf32>
    %66 = arith.truncf %65 : vector<16x8xf32> to vector<16x8xbf16>
    %67 = vector.extract_strided_slice %9 {offsets = [0, 16], sizes = [16, 8], strides = [1, 1]} : vector<16x32xf32> to vector<16x8xf32>
    %68 = arith.truncf %67 : vector<16x8xf32> to vector<16x8xbf16>
    %69 = vector.extract_strided_slice %10 {offsets = [0, 16], sizes = [16, 8], strides = [1, 1]} : vector<16x32xf32> to vector<16x8xf32>
    %70 = arith.truncf %69 : vector<16x8xf32> to vector<16x8xbf16>
    %cst_20 = arith.constant dense<0.000000e+00> : vector<16x16xf32>
    %71 = tpu.matmul %66, %68, %cst_20 {dimension_numbers = #tpu.dot_dimension_numbers<[1], [1], [0], [0], [0, 0, 1, 0], [], []>} : vector<16x8xbf16>, vector<16x8xbf16>, vector<16x16xf32> -> vector<16x16xf32>
    %cst_21 = arith.constant 0.353553385 : f32
    %72 = vector.broadcast %cst_21 : f32 to vector<16x16xf32>
    %73 = arith.mulf %71, %72 : vector<16x16xf32>
    %cst_22 = arith.constant dense<0xFF800000> : vector<16xf32>
    %74 = vector.multi_reduction <maximumf>, %73, %cst_22 [1] : vector<16x16xf32> to vector<16xf32>
    %75 = vector.shape_cast %74 : vector<16xf32> to vector<16x1xf32>
    %76 = vector.broadcast %75 : vector<16x1xf32> to vector<16x16xf32>
    %77 = arith.subf %73, %76 : vector<16x16xf32>
    %78 = math.exp %77 : vector<16x16xf32>
    %cst_23 = arith.constant dense<0.000000e+00> : vector<16xf32>
    %79 = vector.multi_reduction <add>, %78, %cst_23 [1] : vector<16x16xf32> to vector<16xf32>
    %80 = vector.shape_cast %79 : vector<16xf32> to vector<16x1xf32>
    %81 = tpu.reciprocal %80 {approx = true} : vector<16x1xf32> -> vector<16x1xf32>
    %82 = vector.broadcast %81 : vector<16x1xf32> to vector<16x16xf32>
    %83 = arith.mulf %78, %82 : vector<16x16xf32>
    %84 = arith.truncf %83 : vector<16x16xf32> to vector<16x16xbf16>
    %cst_24 = arith.constant dense<0.000000e+00> : vector<16x8xf32>
    %85 = tpu.matmul %84, %70, %cst_24 {dimension_numbers = #tpu.dot_dimension_numbers<[1], [0], [0], [1], [0, 0, 1, 1], [], []>} : vector<16x16xbf16>, vector<16x8xbf16>, vector<16x8xf32> -> vector<16x8xf32>
    %86 = vector.extract_strided_slice %11 {offsets = [16, 0], sizes = [8, 32], strides = [1, 1]} : vector<32x32xf32> to vector<8x32xf32>
    %87 = arith.truncf %86 : vector<8x32xf32> to vector<8x32xbf16>
    %88 = arith.truncf %85 : vector<16x8xf32> to vector<16x8xbf16>
    %cst_25 = arith.constant dense<0.000000e+00> : vector<16x32xf32>
    %89 = tpu.matmul %88, %87, %cst_25 {dimension_numbers = #tpu.dot_dimension_numbers<[1], [0], [0], [1], [0, 0, 1, 1], [], []>} : vector<16x8xbf16>, vector<8x32xbf16>, vector<16x32xf32> -> vector<16x32xf32>
    %90 = arith.addf %64, %89 : vector<16x32xf32>
    %91 = vector.extract_strided_slice %8 {offsets = [0, 24], sizes = [16, 8], strides = [1, 1]} : vector<16x32xf32> to vector<16x8xf32>
    %92 = arith.truncf %91 : vector<16x8xf32> to vector<16x8xbf16>
    %93 = vector.extract_strided_slice %9 {offsets = [0, 24], sizes = [16, 8], strides = [1, 1]} : vector<16x32xf32> to vector<16x8xf32>
    %94 = arith.truncf %93 : vector<16x8xf32> to vector<16x8xbf16>
    %95 = vector.extract_strided_slice %10 {offsets = [0, 24], sizes = [16, 8], strides = [1, 1]} : vector<16x32xf32> to vector<16x8xf32>
    %96 = arith.truncf %95 : vector<16x8xf32> to vector<16x8xbf16>
    %cst_26 = arith.constant dense<0.000000e+00> : vector<16x16xf32>
    %97 = tpu.matmul %92, %94, %cst_26 {dimension_numbers = #tpu.dot_dimension_numbers<[1], [1], [0], [0], [0, 0, 1, 0], [], []>} : vector<16x8xbf16>, vector<16x8xbf16>, vector<16x16xf32> -> vector<16x16xf32>
    %cst_27 = arith.constant 0.353553385 : f32
    %98 = vector.broadcast %cst_27 : f32 to vector<16x16xf32>
    %99 = arith.mulf %97, %98 : vector<16x16xf32>
    %cst_28 = arith.constant dense<0xFF800000> : vector<16xf32>
    %100 = vector.multi_reduction <maximumf>, %99, %cst_28 [1] : vector<16x16xf32> to vector<16xf32>
    %101 = vector.shape_cast %100 : vector<16xf32> to vector<16x1xf32>
    %102 = vector.broadcast %101 : vector<16x1xf32> to vector<16x16xf32>
    %103 = arith.subf %99, %102 : vector<16x16xf32>
    %104 = math.exp %103 : vector<16x16xf32>
    %cst_29 = arith.constant dense<0.000000e+00> : vector<16xf32>
    %105 = vector.multi_reduction <add>, %104, %cst_29 [1] : vector<16x16xf32> to vector<16xf32>
    %106 = vector.shape_cast %105 : vector<16xf32> to vector<16x1xf32>
    %107 = tpu.reciprocal %106 {approx = true} : vector<16x1xf32> -> vector<16x1xf32>
    %108 = vector.broadcast %107 : vector<16x1xf32> to vector<16x16xf32>
    %109 = arith.mulf %104, %108 : vector<16x16xf32>
    %110 = arith.truncf %109 : vector<16x16xf32> to vector<16x16xbf16>
    %cst_30 = arith.constant dense<0.000000e+00> : vector<16x8xf32>
    %111 = tpu.matmul %110, %96, %cst_30 {dimension_numbers = #tpu.dot_dimension_numbers<[1], [0], [0], [1], [0, 0, 1, 1], [], []>} : vector<16x16xbf16>, vector<16x8xbf16>, vector<16x8xf32> -> vector<16x8xf32>
    %112 = vector.extract_strided_slice %11 {offsets = [24, 0], sizes = [8, 32], strides = [1, 1]} : vector<32x32xf32> to vector<8x32xf32>
    %113 = arith.truncf %112 : vector<8x32xf32> to vector<8x32xbf16>
    %114 = arith.truncf %111 : vector<16x8xf32> to vector<16x8xbf16>
    %cst_31 = arith.constant dense<0.000000e+00> : vector<16x32xf32>
    %115 = tpu.matmul %114, %113, %cst_31 {dimension_numbers = #tpu.dot_dimension_numbers<[1], [0], [0], [1], [0, 0, 1, 1], [], []>} : vector<16x8xbf16>, vector<8x32xbf16>, vector<16x32xf32> -> vector<16x32xf32>
    %116 = arith.addf %90, %115 : vector<16x32xf32>
    %c0_32 = arith.constant 0 : index
    %c0_33 = arith.constant 0 : index
    %117 = vector.load %arg5[%c0_32, %c0_33] : memref<1x32xf32, #tpu.memory_space<vmem>>, vector<1x32xf32>
    %118 = vector.broadcast %117 : vector<1x32xf32> to vector<16x32xf32>
    %119 = arith.addf %116, %118 : vector<16x32xf32>
    %120 = arith.addf %0, %119 : vector<16x32xf32>
    %c0_34 = arith.constant 0 : index
    %c0_35 = arith.constant 0 : index
    %121 = vector.load %arg6[%c0_34, %c0_35] : memref<1x32xf32, #tpu.memory_space<vmem>>, vector<1x32xf32>
    %c0_36 = arith.constant 0 : index
    %c0_37 = arith.constant 0 : index
    %122 = vector.load %arg7[%c0_36, %c0_37] : memref<1x32xf32, #tpu.memory_space<vmem>>, vector<1x32xf32>
    %cst_38 = arith.constant dense<0.000000e+00> : vector<16xf32>
    %123 = vector.multi_reduction <add>, %120, %cst_38 [1] : vector<16x32xf32> to vector<16xf32>
    %124 = vector.shape_cast %123 : vector<16xf32> to vector<16x1xf32>
    %cst_39 = arith.constant 3.200000e+01 : f32
    %125 = vector.broadcast %cst_39 : f32 to vector<16x1xf32>
    %126 = arith.divf %124, %125 : vector<16x1xf32>
    %127 = vector.broadcast %126 : vector<16x1xf32> to vector<16x32xf32>
    %128 = arith.subf %120, %127 : vector<16x32xf32>
    %129 = arith.mulf %128, %128 : vector<16x32xf32>
    %cst_40 = arith.constant dense<0.000000e+00> : vector<16xf32>
    %130 = vector.multi_reduction <add>, %129, %cst_40 [1] : vector<16x32xf32> to vector<16xf32>
    %131 = vector.shape_cast %130 : vector<16xf32> to vector<16x1xf32>
    %cst_41 = arith.constant 3.200000e+01 : f32
    %132 = vector.broadcast %cst_41 : f32 to vector<16x1xf32>
    %133 = arith.divf %131, %132 : vector<16x1xf32>
    %cst_42 = arith.constant 9.99999974E-6 : f32
    %134 = vector.broadcast %cst_42 : f32 to vector<16x1xf32>
    %135 = arith.addf %133, %134 : vector<16x1xf32>
    %136 = math.rsqrt %135 : vector<16x1xf32>
    %137 = vector.broadcast %136 : vector<16x1xf32> to vector<16x32xf32>
    %138 = arith.mulf %128, %137 : vector<16x32xf32>
    %139 = vector.broadcast %121 : vector<1x32xf32> to vector<16x32xf32>
    %140 = arith.mulf %138, %139 : vector<16x32xf32>
    %141 = vector.broadcast %122 : vector<1x32xf32> to vector<16x32xf32>
    %142 = arith.addf %140, %141 : vector<16x32xf32>
    %c0_43 = arith.constant 0 : index
    %c0_44 = arith.constant 0 : index
    %143 = vector.load %arg8[%c0_43, %c0_44] : memref<16x32xf32, #tpu.memory_space<vmem>>, vector<16x32xf32>
    tpu.vector_store %arg8[%c0_43, %c0_44], %142 {strides = array<i32>} : memref<16x32xf32, #tpu.memory_space<vmem>>, vector<16x32xf32>,
    return
  }
  func.func @transform_0(%arg0: i32) -> (i32, i32) {
    %c0_i32 = arith.constant 0 : i32
    %c0_i32_0 = arith.constant 0 : i32
    return %arg0, %c0_i32 : i32, i32
  }
  func.func @transform_1(%arg0: i32) -> (i32, i32) {
    %c0_i32 = arith.constant 0 : i32
    %c0_i32_0 = arith.constant 0 : i32
    %c0_i32_1 = arith.constant 0 : i32
    return %c0_i32, %c0_i32_0 : i32, i32
  }
  func.func @transform_2(%arg0: i32) -> (i32, i32) {
    %c0_i32 = arith.constant 0 : i32
    %c0_i32_0 = arith.constant 0 : i32
    %c0_i32_1 = arith.constant 0 : i32
    return %c0_i32, %c0_i32_0 : i32, i32
  }
  func.func @transform_3(%arg0: i32) -> (i32, i32) {
    %c0_i32 = arith.constant 0 : i32
    %c0_i32_0 = arith.constant 0 : i32
    %c0_i32_1 = arith.constant 0 : i32
    return %c0_i32, %c0_i32_0 : i32, i32
  }
  func.func @transform_4(%arg0: i32) -> (i32, i32) {
    %c0_i32 = arith.constant 0 : i32
    %c0_i32_0 = arith.constant 0 : i32
    %c0_i32_1 = arith.constant 0 : i32
    return %c0_i32, %c0_i32_0 : i32, i32
  }
  func.func @transform_5(%arg0: i32) -> (i32, i32) {
    %c0_i32 = arith.constant 0 : i32
    %c0_i32_0 = arith.constant 0 : i32
    %c0_i32_1 = arith.constant 0 : i32
    return %c0_i32, %c0_i32_0 : i32, i32
  }
  func.func @transform_6(%arg0: i32) -> (i32, i32) {
    %c0_i32 = arith.constant 0 : i32
    %c0_i32_0 = arith.constant 0 : i32
    %c0_i32_1 = arith.constant 0 : i32
    return %c0_i32, %c0_i32_0 : i32, i32
  }
  func.func @transform_7(%arg0: i32) -> (i32, i32) {
    %c0_i32 = arith.constant 0 : i32
    %c0_i32_0 = arith.constant 0 : i32
    return %arg0, %c0_i32 : i32, i32
  }
}

module attributes {stable_mosaic.version = 11 : i64} {
  func.func @_ffn_ln_kernel(%arg0: i32, %arg1: memref<16x32xf32, #tpu.memory_space<vmem>>, %arg2: memref<32x64xf32, #tpu.memory_space<vmem>>, %arg3: memref<1x64xf32, #tpu.memory_space<vmem>>, %arg4: memref<64x32xf32, #tpu.memory_space<vmem>>, %arg5: memref<1x32xf32, #tpu.memory_space<vmem>>, %arg6: memref<1x32xf32, #tpu.memory_space<vmem>>, %arg7: memref<1x32xf32, #tpu.memory_space<vmem>>, %arg8: memref<16x32xf32, #tpu.memory_space<vmem>>) attributes {dimension_semantics = [#tpu.dimension_semantics<parallel>], iteration_bounds = array<i64: 2>, scalar_prefetch = 0 : i64, scratch_operands = 0 : i64, tpu.core_type = #tpu.core_type<tc>, window_params = [{transform_indices = @transform_0, window_bounds = array<i64: 16, 32>}, {pipeline_mode = #tpu.pipeline_mode<synchronous>, transform_indices = @transform_1, window_bounds = array<i64: 32, 64>}, {pipeline_mode = #tpu.pipeline_mode<synchronous>, transform_indices = @transform_2, window_bounds = array<i64: 1, 64>}, {pipeline_mode = #tpu.pipeline_mode<synchronous>, transform_indices = @transform_3, window_bounds = array<i64: 64, 32>}, {pipeline_mode = #tpu.pipeline_mode<synchronous>, transform_indices = @transform_4, window_bounds = array<i64: 1, 32>}, {pipeline_mode = #tpu.pipeline_mode<synchronous>, transform_indices = @transform_5, window_bounds = array<i64: 1, 32>}, {pipeline_mode = #tpu.pipeline_mode<synchronous>, transform_indices = @transform_6, window_bounds = array<i64: 1, 32>}, {transform_indices = @transform_7, window_bounds = array<i64: 16, 32>}]} {
    %c0 = arith.constant 0 : index
    %c0_0 = arith.constant 0 : index
    %0 = vector.load %arg1[%c0, %c0_0] : memref<16x32xf32, #tpu.memory_space<vmem>>, vector<16x32xf32>
    %1 = arith.truncf %0 : vector<16x32xf32> to vector<16x32xbf16>
    %c0_1 = arith.constant 0 : index
    %c0_2 = arith.constant 0 : index
    %2 = vector.load %arg2[%c0_1, %c0_2] : memref<32x64xf32, #tpu.memory_space<vmem>>, vector<32x64xf32>
    %3 = arith.truncf %2 : vector<32x64xf32> to vector<32x64xbf16>
    %cst = arith.constant dense<0.000000e+00> : vector<16x64xf32>
    %4 = tpu.matmul %1, %3, %cst {dimension_numbers = #tpu.dot_dimension_numbers<[1], [0], [0], [1], [0, 0, 1, 1], [], []>} : vector<16x32xbf16>, vector<32x64xbf16>, vector<16x64xf32> -> vector<16x64xf32>
    %c0_3 = arith.constant 0 : index
    %c0_4 = arith.constant 0 : index
    %5 = vector.load %arg3[%c0_3, %c0_4] : memref<1x64xf32, #tpu.memory_space<vmem>>, vector<1x64xf32>
    %6 = vector.broadcast %5 : vector<1x64xf32> to vector<16x64xf32>
    %7 = arith.addf %4, %6 : vector<16x64xf32>
    %cst_5 = arith.constant 0.000000e+00 : f32
    %8 = vector.broadcast %cst_5 : f32 to vector<16x64xf32>
    %9 = arith.maximumf %7, %8 : vector<16x64xf32>
    %10 = arith.truncf %9 : vector<16x64xf32> to vector<16x64xbf16>
    %c0_6 = arith.constant 0 : index
    %c0_7 = arith.constant 0 : index
    %11 = vector.load %arg4[%c0_6, %c0_7] : memref<64x32xf32, #tpu.memory_space<vmem>>, vector<64x32xf32>
    %12 = arith.truncf %11 : vector<64x32xf32> to vector<64x32xbf16>
    %cst_8 = arith.constant dense<0.000000e+00> : vector<16x32xf32>
    %13 = tpu.matmul %10, %12, %cst_8 {dimension_numbers = #tpu.dot_dimension_numbers<[1], [0], [0], [1], [0, 0, 1, 1], [], []>} : vector<16x64xbf16>, vector<64x32xbf16>, vector<16x32xf32> -> vector<16x32xf32>
    %c0_9 = arith.constant 0 : index
    %c0_10 = arith.constant 0 : index
    %14 = vector.load %arg5[%c0_9, %c0_10] : memref<1x32xf32, #tpu.memory_space<vmem>>, vector<1x32xf32>
    %15 = vector.broadcast %14 : vector<1x32xf32> to vector<16x32xf32>
    %16 = arith.addf %13, %15 : vector<16x32xf32>
    %17 = arith.addf %0, %16 : vector<16x32xf32>
    %c0_11 = arith.constant 0 : index
    %c0_12 = arith.constant 0 : index
    %18 = vector.load %arg6[%c0_11, %c0_12] : memref<1x32xf32, #tpu.memory_space<vmem>>, vector<1x32xf32>
    %c0_13 = arith.constant 0 : index
    %c0_14 = arith.constant 0 : index
    %19 = vector.load %arg7[%c0_13, %c0_14] : memref<1x32xf32, #tpu.memory_space<vmem>>, vector<1x32xf32>
    %cst_15 = arith.constant dense<0.000000e+00> : vector<16xf32>
    %20 = vector.multi_reduction <add>, %17, %cst_15 [1] : vector<16x32xf32> to vector<16xf32>
    %21 = vector.shape_cast %20 : vector<16xf32> to vector<16x1xf32>
    %cst_16 = arith.constant 3.200000e+01 : f32
    %22 = vector.broadcast %cst_16 : f32 to vector<16x1xf32>
    %23 = arith.divf %21, %22 : vector<16x1xf32>
    %24 = vector.broadcast %23 : vector<16x1xf32> to vector<16x32xf32>
    %25 = arith.subf %17, %24 : vector<16x32xf32>
    %26 = arith.mulf %25, %25 : vector<16x32xf32>
    %cst_17 = arith.constant dense<0.000000e+00> : vector<16xf32>
    %27 = vector.multi_reduction <add>, %26, %cst_17 [1] : vector<16x32xf32> to vector<16xf32>
    %28 = vector.shape_cast %27 : vector<16xf32> to vector<16x1xf32>
    %cst_18 = arith.constant 3.200000e+01 : f32
    %29 = vector.broadcast %cst_18 : f32 to vector<16x1xf32>
    %30 = arith.divf %28, %29 : vector<16x1xf32>
    %cst_19 = arith.constant 9.99999974E-6 : f32
    %31 = vector.broadcast %cst_19 : f32 to vector<16x1xf32>
    %32 = arith.addf %30, %31 : vector<16x1xf32>
    %33 = math.rsqrt %32 : vector<16x1xf32>
    %34 = vector.broadcast %33 : vector<16x1xf32> to vector<16x32xf32>
    %35 = arith.mulf %25, %34 : vector<16x32xf32>
    %36 = vector.broadcast %18 : vector<1x32xf32> to vector<16x32xf32>
    %37 = arith.mulf %35, %36 : vector<16x32xf32>
    %38 = vector.broadcast %19 : vector<1x32xf32> to vector<16x32xf32>
    %39 = arith.addf %37, %38 : vector<16x32xf32>
    %c0_20 = arith.constant 0 : index
    %c0_21 = arith.constant 0 : index
    %40 = vector.load %arg8[%c0_20, %c0_21] : memref<16x32xf32, #tpu.memory_space<vmem>>, vector<16x32xf32>
    tpu.vector_store %arg8[%c0_20, %c0_21], %39 {strides = array<i32>} : memref<16x32xf32, #tpu.memory_space<vmem>>, vector<16x32xf32>,
    return
  }
  func.func @transform_0(%arg0: i32) -> (i32, i32) {
    %c0_i32 = arith.constant 0 : i32
    %c0_i32_0 = arith.constant 0 : i32
    return %arg0, %c0_i32 : i32, i32
  }
  func.func @transform_1(%arg0: i32) -> (i32, i32) {
    %c0_i32 = arith.constant 0 : i32
    %c0_i32_0 = arith.constant 0 : i32
    %c0_i32_1 = arith.constant 0 : i32
    return %c0_i32, %c0_i32_0 : i32, i32
  }
  func.func @transform_2(%arg0: i32) -> (i32, i32) {
    %c0_i32 = arith.constant 0 : i32
    %c0_i32_0 = arith.constant 0 : i32
    %c0_i32_1 = arith.constant 0 : i32
    return %c0_i32, %c0_i32_0 : i32, i32
  }
  func.func @transform_3(%arg0: i32) -> (i32, i32) {
    %c0_i32 = arith.constant 0 : i32
    %c0_i32_0 = arith.constant 0 : i32
    %c0_i32_1 = arith.constant 0 : i32
    return %c0_i32, %c0_i32_0 : i32, i32
  }
  func.func @transform_4(%arg0: i32) -> (i32, i32) {
    %c0_i32 = arith.constant 0 : i32
    %c0_i32_0 = arith.constant 0 : i32
    %c0_i32_1 = arith.constant 0 : i32
    return %c0_i32, %c0_i32_0 : i32, i32
  }
  func.func @transform_5(%arg0: i32) -> (i32, i32) {
    %c0_i32 = arith.constant 0 : i32
    %c0_i32_0 = arith.constant 0 : i32
    %c0_i32_1 = arith.constant 0 : i32
    return %c0_i32, %c0_i32_0 : i32, i32
  }
  func.func @transform_6(%arg0: i32) -> (i32, i32) {
    %c0_i32 = arith.constant 0 : i32
    %c0_i32_0 = arith.constant 0 : i32
    %c0_i32_1 = arith.constant 0 : i32
    return %c0_i32, %c0_i32_0 : i32, i32
  }
  func.func @transform_7(%arg0: i32) -> (i32, i32) {
    %c0_i32 = arith.constant 0 : i32
    %c0_i32_0 = arith.constant 0 : i32
    return %arg0, %c0_i32 : i32, i32
  }
}

module attributes {stable_mosaic.version = 11 : i64} {
  func.func @_cross_attn_ln_kernel(%arg0: i32, %arg1: memref<16x32xf32, #tpu.memory_space<vmem>>, %arg2: memref<16x32xf32, #tpu.memory_space<vmem>>, %arg3: memref<32x32xf32, #tpu.memory_space<vmem>>, %arg4: memref<1x32xf32, #tpu.memory_space<vmem>>, %arg5: memref<32x64xf32, #tpu.memory_space<vmem>>, %arg6: memref<1x64xf32, #tpu.memory_space<vmem>>, %arg7: memref<32x32xf32, #tpu.memory_space<vmem>>, %arg8: memref<1x32xf32, #tpu.memory_space<vmem>>, %arg9: memref<1x32xf32, #tpu.memory_space<vmem>>, %arg10: memref<1x32xf32, #tpu.memory_space<vmem>>, %arg11: memref<16x32xf32, #tpu.memory_space<vmem>>) attributes {dimension_semantics = [#tpu.dimension_semantics<parallel>], iteration_bounds = array<i64: 2>, scalar_prefetch = 0 : i64, scratch_operands = 0 : i64, tpu.core_type = #tpu.core_type<tc>, window_params = [{transform_indices = @transform_0, window_bounds = array<i64: 16, 32>}, {transform_indices = @transform_1, window_bounds = array<i64: 16, 32>}, {pipeline_mode = #tpu.pipeline_mode<synchronous>, transform_indices = @transform_2, window_bounds = array<i64: 32, 32>}, {pipeline_mode = #tpu.pipeline_mode<synchronous>, transform_indices = @transform_3, window_bounds = array<i64: 1, 32>}, {pipeline_mode = #tpu.pipeline_mode<synchronous>, transform_indices = @transform_4, window_bounds = array<i64: 32, 64>}, {pipeline_mode = #tpu.pipeline_mode<synchronous>, transform_indices = @transform_5, window_bounds = array<i64: 1, 64>}, {pipeline_mode = #tpu.pipeline_mode<synchronous>, transform_indices = @transform_6, window_bounds = array<i64: 32, 32>}, {pipeline_mode = #tpu.pipeline_mode<synchronous>, transform_indices = @transform_7, window_bounds = array<i64: 1, 32>}, {pipeline_mode = #tpu.pipeline_mode<synchronous>, transform_indices = @transform_8, window_bounds = array<i64: 1, 32>}, {pipeline_mode = #tpu.pipeline_mode<synchronous>, transform_indices = @transform_9, window_bounds = array<i64: 1, 32>}, {transform_indices = @transform_10, window_bounds = array<i64: 16, 32>}]} {
    %c0 = arith.constant 0 : index
    %c0_0 = arith.constant 0 : index
    %0 = vector.load %arg1[%c0, %c0_0] : memref<16x32xf32, #tpu.memory_space<vmem>>, vector<16x32xf32>
    %c0_1 = arith.constant 0 : index
    %c0_2 = arith.constant 0 : index
    %1 = vector.load %arg2[%c0_1, %c0_2] : memref<16x32xf32, #tpu.memory_space<vmem>>, vector<16x32xf32>
    %2 = arith.truncf %0 : vector<16x32xf32> to vector<16x32xbf16>
    %c0_3 = arith.constant 0 : index
    %c0_4 = arith.constant 0 : index
    %3 = vector.load %arg3[%c0_3, %c0_4] : memref<32x32xf32, #tpu.memory_space<vmem>>, vector<32x32xf32>
    %4 = arith.truncf %3 : vector<32x32xf32> to vector<32x32xbf16>
    %cst = arith.constant dense<0.000000e+00> : vector<16x32xf32>
    %5 = tpu.matmul %2, %4, %cst {dimension_numbers = #tpu.dot_dimension_numbers<[1], [0], [0], [1], [0, 0, 1, 1], [], []>} : vector<16x32xbf16>, vector<32x32xbf16>, vector<16x32xf32> -> vector<16x32xf32>
    %c0_5 = arith.constant 0 : index
    %c0_6 = arith.constant 0 : index
    %6 = vector.load %arg4[%c0_5, %c0_6] : memref<1x32xf32, #tpu.memory_space<vmem>>, vector<1x32xf32>
    %7 = vector.broadcast %6 : vector<1x32xf32> to vector<16x32xf32>
    %8 = arith.addf %5, %7 : vector<16x32xf32>
    %9 = arith.truncf %1 : vector<16x32xf32> to vector<16x32xbf16>
    %c0_7 = arith.constant 0 : index
    %c0_8 = arith.constant 0 : index
    %10 = vector.load %arg5[%c0_7, %c0_8] : memref<32x64xf32, #tpu.memory_space<vmem>>, vector<32x64xf32>
    %11 = arith.truncf %10 : vector<32x64xf32> to vector<32x64xbf16>
    %cst_9 = arith.constant dense<0.000000e+00> : vector<16x64xf32>
    %12 = tpu.matmul %9, %11, %cst_9 {dimension_numbers = #tpu.dot_dimension_numbers<[1], [0], [0], [1], [0, 0, 1, 1], [], []>} : vector<16x32xbf16>, vector<32x64xbf16>, vector<16x64xf32> -> vector<16x64xf32>
    %c0_10 = arith.constant 0 : index
    %c0_11 = arith.constant 0 : index
    %13 = vector.load %arg6[%c0_10, %c0_11] : memref<1x64xf32, #tpu.memory_space<vmem>>, vector<1x64xf32>
    %14 = vector.broadcast %13 : vector<1x64xf32> to vector<16x64xf32>
    %15 = arith.addf %12, %14 : vector<16x64xf32>
    %16 = vector.extract_strided_slice %15 {offsets = [0, 0], sizes = [16, 32], strides = [1, 1]} : vector<16x64xf32> to vector<16x32xf32>
    %17 = vector.extract_strided_slice %15 {offsets = [0, 32], sizes = [16, 32], strides = [1, 1]} : vector<16x64xf32> to vector<16x32xf32>
    %c0_12 = arith.constant 0 : index
    %c0_13 = arith.constant 0 : index
    %18 = vector.load %arg7[%c0_12, %c0_13] : memref<32x32xf32, #tpu.memory_space<vmem>>, vector<32x32xf32>
    %cst_14 = arith.constant 0.000000e+00 : f32
    %19 = vector.broadcast %cst_14 : f32 to vector<16x32xf32>
    %20 = vector.extract_strided_slice %8 {offsets = [0, 0], sizes = [16, 8], strides = [1, 1]} : vector<16x32xf32> to vector<16x8xf32>
    %21 = arith.truncf %20 : vector<16x8xf32> to vector<16x8xbf16>
    %22 = vector.extract_strided_slice %16 {offsets = [0, 0], sizes = [16, 8], strides = [1, 1]} : vector<16x32xf32> to vector<16x8xf32>
    %23 = arith.truncf %22 : vector<16x8xf32> to vector<16x8xbf16>
    %24 = vector.extract_strided_slice %17 {offsets = [0, 0], sizes = [16, 8], strides = [1, 1]} : vector<16x32xf32> to vector<16x8xf32>
    %25 = arith.truncf %24 : vector<16x8xf32> to vector<16x8xbf16>
    %cst_15 = arith.constant dense<0.000000e+00> : vector<16x16xf32>
    %26 = tpu.matmul %21, %23, %cst_15 {dimension_numbers = #tpu.dot_dimension_numbers<[1], [1], [0], [0], [0, 0, 1, 0], [], []>} : vector<16x8xbf16>, vector<16x8xbf16>, vector<16x16xf32> -> vector<16x16xf32>
    %cst_16 = arith.constant 0.353553385 : f32
    %27 = vector.broadcast %cst_16 : f32 to vector<16x16xf32>
    %28 = arith.mulf %26, %27 : vector<16x16xf32>
    %cst_17 = arith.constant dense<0xFF800000> : vector<16xf32>
    %29 = vector.multi_reduction <maximumf>, %28, %cst_17 [1] : vector<16x16xf32> to vector<16xf32>
    %30 = vector.shape_cast %29 : vector<16xf32> to vector<16x1xf32>
    %31 = vector.broadcast %30 : vector<16x1xf32> to vector<16x16xf32>
    %32 = arith.subf %28, %31 : vector<16x16xf32>
    %33 = math.exp %32 : vector<16x16xf32>
    %cst_18 = arith.constant dense<0.000000e+00> : vector<16xf32>
    %34 = vector.multi_reduction <add>, %33, %cst_18 [1] : vector<16x16xf32> to vector<16xf32>
    %35 = vector.shape_cast %34 : vector<16xf32> to vector<16x1xf32>
    %36 = tpu.reciprocal %35 {approx = true} : vector<16x1xf32> -> vector<16x1xf32>
    %37 = vector.broadcast %36 : vector<16x1xf32> to vector<16x16xf32>
    %38 = arith.mulf %33, %37 : vector<16x16xf32>
    %39 = arith.truncf %38 : vector<16x16xf32> to vector<16x16xbf16>
    %cst_19 = arith.constant dense<0.000000e+00> : vector<16x8xf32>
    %40 = tpu.matmul %39, %25, %cst_19 {dimension_numbers = #tpu.dot_dimension_numbers<[1], [0], [0], [1], [0, 0, 1, 1], [], []>} : vector<16x16xbf16>, vector<16x8xbf16>, vector<16x8xf32> -> vector<16x8xf32>
    %41 = vector.extract_strided_slice %18 {offsets = [0, 0], sizes = [8, 32], strides = [1, 1]} : vector<32x32xf32> to vector<8x32xf32>
    %42 = arith.truncf %41 : vector<8x32xf32> to vector<8x32xbf16>
    %43 = arith.truncf %40 : vector<16x8xf32> to vector<16x8xbf16>
    %cst_20 = arith.constant dense<0.000000e+00> : vector<16x32xf32>
    %44 = tpu.matmul %43, %42, %cst_20 {dimension_numbers = #tpu.dot_dimension_numbers<[1], [0], [0], [1], [0, 0, 1, 1], [], []>} : vector<16x8xbf16>, vector<8x32xbf16>, vector<16x32xf32> -> vector<16x32xf32>
    %45 = arith.addf %19, %44 : vector<16x32xf32>
    %46 = vector.extract_strided_slice %8 {offsets = [0, 8], sizes = [16, 8], strides = [1, 1]} : vector<16x32xf32> to vector<16x8xf32>
    %47 = arith.truncf %46 : vector<16x8xf32> to vector<16x8xbf16>
    %48 = vector.extract_strided_slice %16 {offsets = [0, 8], sizes = [16, 8], strides = [1, 1]} : vector<16x32xf32> to vector<16x8xf32>
    %49 = arith.truncf %48 : vector<16x8xf32> to vector<16x8xbf16>
    %50 = vector.extract_strided_slice %17 {offsets = [0, 8], sizes = [16, 8], strides = [1, 1]} : vector<16x32xf32> to vector<16x8xf32>
    %51 = arith.truncf %50 : vector<16x8xf32> to vector<16x8xbf16>
    %cst_21 = arith.constant dense<0.000000e+00> : vector<16x16xf32>
    %52 = tpu.matmul %47, %49, %cst_21 {dimension_numbers = #tpu.dot_dimension_numbers<[1], [1], [0], [0], [0, 0, 1, 0], [], []>} : vector<16x8xbf16>, vector<16x8xbf16>, vector<16x16xf32> -> vector<16x16xf32>
    %cst_22 = arith.constant 0.353553385 : f32
    %53 = vector.broadcast %cst_22 : f32 to vector<16x16xf32>
    %54 = arith.mulf %52, %53 : vector<16x16xf32>
    %cst_23 = arith.constant dense<0xFF800000> : vector<16xf32>
    %55 = vector.multi_reduction <maximumf>, %54, %cst_23 [1] : vector<16x16xf32> to vector<16xf32>
    %56 = vector.shape_cast %55 : vector<16xf32> to vector<16x1xf32>
    %57 = vector.broadcast %56 : vector<16x1xf32> to vector<16x16xf32>
    %58 = arith.subf %54, %57 : vector<16x16xf32>
    %59 = math.exp %58 : vector<16x16xf32>
    %cst_24 = arith.constant dense<0.000000e+00> : vector<16xf32>
    %60 = vector.multi_reduction <add>, %59, %cst_24 [1] : vector<16x16xf32> to vector<16xf32>
    %61 = vector.shape_cast %60 : vector<16xf32> to vector<16x1xf32>
    %62 = tpu.reciprocal %61 {approx = true} : vector<16x1xf32> -> vector<16x1xf32>
    %63 = vector.broadcast %62 : vector<16x1xf32> to vector<16x16xf32>
    %64 = arith.mulf %59, %63 : vector<16x16xf32>
    %65 = arith.truncf %64 : vector<16x16xf32> to vector<16x16xbf16>
    %cst_25 = arith.constant dense<0.000000e+00> : vector<16x8xf32>
    %66 = tpu.matmul %65, %51, %cst_25 {dimension_numbers = #tpu.dot_dimension_numbers<[1], [0], [0], [1], [0, 0, 1, 1], [], []>} : vector<16x16xbf16>, vector<16x8xbf16>, vector<16x8xf32> -> vector<16x8xf32>
    %67 = vector.extract_strided_slice %18 {offsets = [8, 0], sizes = [8, 32], strides = [1, 1]} : vector<32x32xf32> to vector<8x32xf32>
    %68 = arith.truncf %67 : vector<8x32xf32> to vector<8x32xbf16>
    %69 = arith.truncf %66 : vector<16x8xf32> to vector<16x8xbf16>
    %cst_26 = arith.constant dense<0.000000e+00> : vector<16x32xf32>
    %70 = tpu.matmul %69, %68, %cst_26 {dimension_numbers = #tpu.dot_dimension_numbers<[1], [0], [0], [1], [0, 0, 1, 1], [], []>} : vector<16x8xbf16>, vector<8x32xbf16>, vector<16x32xf32> -> vector<16x32xf32>
    %71 = arith.addf %45, %70 : vector<16x32xf32>
    %72 = vector.extract_strided_slice %8 {offsets = [0, 16], sizes = [16, 8], strides = [1, 1]} : vector<16x32xf32> to vector<16x8xf32>
    %73 = arith.truncf %72 : vector<16x8xf32> to vector<16x8xbf16>
    %74 = vector.extract_strided_slice %16 {offsets = [0, 16], sizes = [16, 8], strides = [1, 1]} : vector<16x32xf32> to vector<16x8xf32>
    %75 = arith.truncf %74 : vector<16x8xf32> to vector<16x8xbf16>
    %76 = vector.extract_strided_slice %17 {offsets = [0, 16], sizes = [16, 8], strides = [1, 1]} : vector<16x32xf32> to vector<16x8xf32>
    %77 = arith.truncf %76 : vector<16x8xf32> to vector<16x8xbf16>
    %cst_27 = arith.constant dense<0.000000e+00> : vector<16x16xf32>
    %78 = tpu.matmul %73, %75, %cst_27 {dimension_numbers = #tpu.dot_dimension_numbers<[1], [1], [0], [0], [0, 0, 1, 0], [], []>} : vector<16x8xbf16>, vector<16x8xbf16>, vector<16x16xf32> -> vector<16x16xf32>
    %cst_28 = arith.constant 0.353553385 : f32
    %79 = vector.broadcast %cst_28 : f32 to vector<16x16xf32>
    %80 = arith.mulf %78, %79 : vector<16x16xf32>
    %cst_29 = arith.constant dense<0xFF800000> : vector<16xf32>
    %81 = vector.multi_reduction <maximumf>, %80, %cst_29 [1] : vector<16x16xf32> to vector<16xf32>
    %82 = vector.shape_cast %81 : vector<16xf32> to vector<16x1xf32>
    %83 = vector.broadcast %82 : vector<16x1xf32> to vector<16x16xf32>
    %84 = arith.subf %80, %83 : vector<16x16xf32>
    %85 = math.exp %84 : vector<16x16xf32>
    %cst_30 = arith.constant dense<0.000000e+00> : vector<16xf32>
    %86 = vector.multi_reduction <add>, %85, %cst_30 [1] : vector<16x16xf32> to vector<16xf32>
    %87 = vector.shape_cast %86 : vector<16xf32> to vector<16x1xf32>
    %88 = tpu.reciprocal %87 {approx = true} : vector<16x1xf32> -> vector<16x1xf32>
    %89 = vector.broadcast %88 : vector<16x1xf32> to vector<16x16xf32>
    %90 = arith.mulf %85, %89 : vector<16x16xf32>
    %91 = arith.truncf %90 : vector<16x16xf32> to vector<16x16xbf16>
    %cst_31 = arith.constant dense<0.000000e+00> : vector<16x8xf32>
    %92 = tpu.matmul %91, %77, %cst_31 {dimension_numbers = #tpu.dot_dimension_numbers<[1], [0], [0], [1], [0, 0, 1, 1], [], []>} : vector<16x16xbf16>, vector<16x8xbf16>, vector<16x8xf32> -> vector<16x8xf32>
    %93 = vector.extract_strided_slice %18 {offsets = [16, 0], sizes = [8, 32], strides = [1, 1]} : vector<32x32xf32> to vector<8x32xf32>
    %94 = arith.truncf %93 : vector<8x32xf32> to vector<8x32xbf16>
    %95 = arith.truncf %92 : vector<16x8xf32> to vector<16x8xbf16>
    %cst_32 = arith.constant dense<0.000000e+00> : vector<16x32xf32>
    %96 = tpu.matmul %95, %94, %cst_32 {dimension_numbers = #tpu.dot_dimension_numbers<[1], [0], [0], [1], [0, 0, 1, 1], [], []>} : vector<16x8xbf16>, vector<8x32xbf16>, vector<16x32xf32> -> vector<16x32xf32>
    %97 = arith.addf %71, %96 : vector<16x32xf32>
    %98 = vector.extract_strided_slice %8 {offsets = [0, 24], sizes = [16, 8], strides = [1, 1]} : vector<16x32xf32> to vector<16x8xf32>
    %99 = arith.truncf %98 : vector<16x8xf32> to vector<16x8xbf16>
    %100 = vector.extract_strided_slice %16 {offsets = [0, 24], sizes = [16, 8], strides = [1, 1]} : vector<16x32xf32> to vector<16x8xf32>
    %101 = arith.truncf %100 : vector<16x8xf32> to vector<16x8xbf16>
    %102 = vector.extract_strided_slice %17 {offsets = [0, 24], sizes = [16, 8], strides = [1, 1]} : vector<16x32xf32> to vector<16x8xf32>
    %103 = arith.truncf %102 : vector<16x8xf32> to vector<16x8xbf16>
    %cst_33 = arith.constant dense<0.000000e+00> : vector<16x16xf32>
    %104 = tpu.matmul %99, %101, %cst_33 {dimension_numbers = #tpu.dot_dimension_numbers<[1], [1], [0], [0], [0, 0, 1, 0], [], []>} : vector<16x8xbf16>, vector<16x8xbf16>, vector<16x16xf32> -> vector<16x16xf32>
    %cst_34 = arith.constant 0.353553385 : f32
    %105 = vector.broadcast %cst_34 : f32 to vector<16x16xf32>
    %106 = arith.mulf %104, %105 : vector<16x16xf32>
    %cst_35 = arith.constant dense<0xFF800000> : vector<16xf32>
    %107 = vector.multi_reduction <maximumf>, %106, %cst_35 [1] : vector<16x16xf32> to vector<16xf32>
    %108 = vector.shape_cast %107 : vector<16xf32> to vector<16x1xf32>
    %109 = vector.broadcast %108 : vector<16x1xf32> to vector<16x16xf32>
    %110 = arith.subf %106, %109 : vector<16x16xf32>
    %111 = math.exp %110 : vector<16x16xf32>
    %cst_36 = arith.constant dense<0.000000e+00> : vector<16xf32>
    %112 = vector.multi_reduction <add>, %111, %cst_36 [1] : vector<16x16xf32> to vector<16xf32>
    %113 = vector.shape_cast %112 : vector<16xf32> to vector<16x1xf32>
    %114 = tpu.reciprocal %113 {approx = true} : vector<16x1xf32> -> vector<16x1xf32>
    %115 = vector.broadcast %114 : vector<16x1xf32> to vector<16x16xf32>
    %116 = arith.mulf %111, %115 : vector<16x16xf32>
    %117 = arith.truncf %116 : vector<16x16xf32> to vector<16x16xbf16>
    %cst_37 = arith.constant dense<0.000000e+00> : vector<16x8xf32>
    %118 = tpu.matmul %117, %103, %cst_37 {dimension_numbers = #tpu.dot_dimension_numbers<[1], [0], [0], [1], [0, 0, 1, 1], [], []>} : vector<16x16xbf16>, vector<16x8xbf16>, vector<16x8xf32> -> vector<16x8xf32>
    %119 = vector.extract_strided_slice %18 {offsets = [24, 0], sizes = [8, 32], strides = [1, 1]} : vector<32x32xf32> to vector<8x32xf32>
    %120 = arith.truncf %119 : vector<8x32xf32> to vector<8x32xbf16>
    %121 = arith.truncf %118 : vector<16x8xf32> to vector<16x8xbf16>
    %cst_38 = arith.constant dense<0.000000e+00> : vector<16x32xf32>
    %122 = tpu.matmul %121, %120, %cst_38 {dimension_numbers = #tpu.dot_dimension_numbers<[1], [0], [0], [1], [0, 0, 1, 1], [], []>} : vector<16x8xbf16>, vector<8x32xbf16>, vector<16x32xf32> -> vector<16x32xf32>
    %123 = arith.addf %97, %122 : vector<16x32xf32>
    %c0_39 = arith.constant 0 : index
    %c0_40 = arith.constant 0 : index
    %124 = vector.load %arg8[%c0_39, %c0_40] : memref<1x32xf32, #tpu.memory_space<vmem>>, vector<1x32xf32>
    %125 = vector.broadcast %124 : vector<1x32xf32> to vector<16x32xf32>
    %126 = arith.addf %123, %125 : vector<16x32xf32>
    %127 = arith.addf %0, %126 : vector<16x32xf32>
    %c0_41 = arith.constant 0 : index
    %c0_42 = arith.constant 0 : index
    %128 = vector.load %arg9[%c0_41, %c0_42] : memref<1x32xf32, #tpu.memory_space<vmem>>, vector<1x32xf32>
    %c0_43 = arith.constant 0 : index
    %c0_44 = arith.constant 0 : index
    %129 = vector.load %arg10[%c0_43, %c0_44] : memref<1x32xf32, #tpu.memory_space<vmem>>, vector<1x32xf32>
    %cst_45 = arith.constant dense<0.000000e+00> : vector<16xf32>
    %130 = vector.multi_reduction <add>, %127, %cst_45 [1] : vector<16x32xf32> to vector<16xf32>
    %131 = vector.shape_cast %130 : vector<16xf32> to vector<16x1xf32>
    %cst_46 = arith.constant 3.200000e+01 : f32
    %132 = vector.broadcast %cst_46 : f32 to vector<16x1xf32>
    %133 = arith.divf %131, %132 : vector<16x1xf32>
    %134 = vector.broadcast %133 : vector<16x1xf32> to vector<16x32xf32>
    %135 = arith.subf %127, %134 : vector<16x32xf32>
    %136 = arith.mulf %135, %135 : vector<16x32xf32>
    %cst_47 = arith.constant dense<0.000000e+00> : vector<16xf32>
    %137 = vector.multi_reduction <add>, %136, %cst_47 [1] : vector<16x32xf32> to vector<16xf32>
    %138 = vector.shape_cast %137 : vector<16xf32> to vector<16x1xf32>
    %cst_48 = arith.constant 3.200000e+01 : f32
    %139 = vector.broadcast %cst_48 : f32 to vector<16x1xf32>
    %140 = arith.divf %138, %139 : vector<16x1xf32>
    %cst_49 = arith.constant 9.99999974E-6 : f32
    %141 = vector.broadcast %cst_49 : f32 to vector<16x1xf32>
    %142 = arith.addf %140, %141 : vector<16x1xf32>
    %143 = math.rsqrt %142 : vector<16x1xf32>
    %144 = vector.broadcast %143 : vector<16x1xf32> to vector<16x32xf32>
    %145 = arith.mulf %135, %144 : vector<16x32xf32>
    %146 = vector.broadcast %128 : vector<1x32xf32> to vector<16x32xf32>
    %147 = arith.mulf %145, %146 : vector<16x32xf32>
    %148 = vector.broadcast %129 : vector<1x32xf32> to vector<16x32xf32>
    %149 = arith.addf %147, %148 : vector<16x32xf32>
    %c0_50 = arith.constant 0 : index
    %c0_51 = arith.constant 0 : index
    %150 = vector.load %arg11[%c0_50, %c0_51] : memref<16x32xf32, #tpu.memory_space<vmem>>, vector<16x32xf32>
    tpu.vector_store %arg11[%c0_50, %c0_51], %149 {strides = array<i32>} : memref<16x32xf32, #tpu.memory_space<vmem>>, vector<16x32xf32>,
    return
  }
  func.func @transform_0(%arg0: i32) -> (i32, i32) {
    %c0_i32 = arith.constant 0 : i32
    %c0_i32_0 = arith.constant 0 : i32
    return %arg0, %c0_i32 : i32, i32
  }
  func.func @transform_1(%arg0: i32) -> (i32, i32) {
    %c0_i32 = arith.constant 0 : i32
    %c0_i32_0 = arith.constant 0 : i32
    return %arg0, %c0_i32 : i32, i32
  }
  func.func @transform_2(%arg0: i32) -> (i32, i32) {
    %c0_i32 = arith.constant 0 : i32
    %c0_i32_0 = arith.constant 0 : i32
    %c0_i32_1 = arith.constant 0 : i32
    return %c0_i32, %c0_i32_0 : i32, i32
  }
  func.func @transform_3(%arg0: i32) -> (i32, i32) {
    %c0_i32 = arith.constant 0 : i32
    %c0_i32_0 = arith.constant 0 : i32
    %c0_i32_1 = arith.constant 0 : i32
    return %c0_i32, %c0_i32_0 : i32, i32
  }
  func.func @transform_4(%arg0: i32) -> (i32, i32) {
    %c0_i32 = arith.constant 0 : i32
    %c0_i32_0 = arith.constant 0 : i32
    %c0_i32_1 = arith.constant 0 : i32
    return %c0_i32, %c0_i32_0 : i32, i32
  }
  func.func @transform_5(%arg0: i32) -> (i32, i32) {
    %c0_i32 = arith.constant 0 : i32
    %c0_i32_0 = arith.constant 0 : i32
    %c0_i32_1 = arith.constant 0 : i32
    return %c0_i32, %c0_i32_0 : i32, i32
  }
  func.func @transform_6(%arg0: i32) -> (i32, i32) {
    %c0_i32 = arith.constant 0 : i32
    %c0_i32_0 = arith.constant 0 : i32
    %c0_i32_1 = arith.constant 0 : i32
    return %c0_i32, %c0_i32_0 : i32, i32
  }
  func.func @transform_7(%arg0: i32) -> (i32, i32) {
    %c0_i32 = arith.constant 0 : i32
    %c0_i32_0 = arith.constant 0 : i32
    %c0_i32_1 = arith.constant 0 : i32
    return %c0_i32, %c0_i32_0 : i32, i32
  }
  func.func @transform_8(%arg0: i32) -> (i32, i32) {
    %c0_i32 = arith.constant 0 : i32
    %c0_i32_0 = arith.constant 0 : i32
    %c0_i32_1 = arith.constant 0 : i32
    return %c0_i32, %c0_i32_0 : i32, i32
  }
  func.func @transform_9(%arg0: i32) -> (i32, i32) {
    %c0_i32 = arith.constant 0 : i32
    %c0_i32_0 = arith.constant 0 : i32
    %c0_i32_1 = arith.constant 0 : i32
    return %c0_i32, %c0_i32_0 : i32, i32
  }
  func.func @transform_10(%arg0: i32) -> (i32, i32) {
    %c0_i32 = arith.constant 0 : i32
    %c0_i32_0 = arith.constant 0 : i32
    return %arg0, %c0_i32 : i32, i32
  }
}

module attributes {stable_mosaic.version = 11 : i64} {
  func.func @_outproj_kernel(%arg0: i32, %arg1: memref<16x32xf32, #tpu.memory_space<vmem>>, %arg2: memref<32x4xf32, #tpu.memory_space<vmem>>, %arg3: memref<1x4xf32, #tpu.memory_space<vmem>>, %arg4: memref<16x4xf32, #tpu.memory_space<vmem>>) attributes {dimension_semantics = [#tpu.dimension_semantics<parallel>], iteration_bounds = array<i64: 2>, scalar_prefetch = 0 : i64, scratch_operands = 0 : i64, tpu.core_type = #tpu.core_type<tc>, window_params = [{transform_indices = @transform_0, window_bounds = array<i64: 16, 32>}, {pipeline_mode = #tpu.pipeline_mode<synchronous>, transform_indices = @transform_1, window_bounds = array<i64: 32, 4>}, {pipeline_mode = #tpu.pipeline_mode<synchronous>, transform_indices = @transform_2, window_bounds = array<i64: 1, 4>}, {transform_indices = @transform_3, window_bounds = array<i64: 16, 4>}]} {
    %c0 = arith.constant 0 : index
    %c0_0 = arith.constant 0 : index
    %0 = vector.load %arg1[%c0, %c0_0] : memref<16x32xf32, #tpu.memory_space<vmem>>, vector<16x32xf32>
    %1 = arith.truncf %0 : vector<16x32xf32> to vector<16x32xbf16>
    %c0_1 = arith.constant 0 : index
    %c0_2 = arith.constant 0 : index
    %2 = vector.load %arg2[%c0_1, %c0_2] : memref<32x4xf32, #tpu.memory_space<vmem>>, vector<32x4xf32>
    %3 = arith.truncf %2 : vector<32x4xf32> to vector<32x4xbf16>
    %cst = arith.constant dense<0.000000e+00> : vector<16x4xf32>
    %4 = tpu.matmul %1, %3, %cst {dimension_numbers = #tpu.dot_dimension_numbers<[1], [0], [0], [1], [0, 0, 1, 1], [], []>} : vector<16x32xbf16>, vector<32x4xbf16>, vector<16x4xf32> -> vector<16x4xf32>
    %c0_3 = arith.constant 0 : index
    %c0_4 = arith.constant 0 : index
    %5 = vector.load %arg3[%c0_3, %c0_4] : memref<1x4xf32, #tpu.memory_space<vmem>>, vector<1x4xf32>
    %6 = vector.broadcast %5 : vector<1x4xf32> to vector<16x4xf32>
    %7 = arith.addf %4, %6 : vector<16x4xf32>
    %c0_5 = arith.constant 0 : index
    %c0_6 = arith.constant 0 : index
    %8 = vector.load %arg4[%c0_5, %c0_6] : memref<16x4xf32, #tpu.memory_space<vmem>>, vector<16x4xf32>
    tpu.vector_store %arg4[%c0_5, %c0_6], %7 {strides = array<i32>} : memref<16x4xf32, #tpu.memory_space<vmem>>, vector<16x4xf32>,
    return
  }
  func.func @transform_0(%arg0: i32) -> (i32, i32) {
    %c0_i32 = arith.constant 0 : i32
    %c0_i32_0 = arith.constant 0 : i32
    return %arg0, %c0_i32 : i32, i32
  }
  func.func @transform_1(%arg0: i32) -> (i32, i32) {
    %c0_i32 = arith.constant 0 : i32
    %c0_i32_0 = arith.constant 0 : i32
    %c0_i32_1 = arith.constant 0 : i32
    return %c0_i32, %c0_i32_0 : i32, i32
  }
  func.func @transform_2(%arg0: i32) -> (i32, i32) {
    %c0_i32 = arith.constant 0 : i32
    %c0_i32_0 = arith.constant 0 : i32
    %c0_i32_1 = arith.constant 0 : i32
    return %c0_i32, %c0_i32_0 : i32, i32
  }
  func.func @transform_3(%arg0: i32) -> (i32, i32) {
    %c0_i32 = arith.constant 0 : i32
    %c0_i32_0 = arith.constant 0 : i32
    return %arg0, %c0_i32 : i32, i32
  }
}

</mosaic_0001>

<bundles_post_ra>
// kernel: transformer_ae_forward.12
= control target key start
LH: loop header
LB: loop body
LE: loop exit
PB: predicated region body
PF: predicated region fallthrough
CT: control target
= control target key end

     0   :  { %s392_s15 = smov 0   ;;  %s421_s0 = inlined_call_operand.vmem [shape: f32[32,4], index: 0, kind: input, shape index: {}]   ;;  %s422_s1 = inlined_call_operand.vmem [shape: f32[4,32], index: 1, kind: input, shape index: {}]   ;;  %s423_s2 = inlined_call_operand.vmem [shape: f32[1,32], index: 2, kind: input, shape index: {}]   ;;  %s424_s3 = inlined_call_operand.vmem [shape: f32[16,32], index: 3, kind: input, shape index: {}]   ;;  %s425_s4 = inlined_call_operand.vmem [shape: f32[32,32], index: 4, kind: output, shape index: {}]  }
   0x1 LB: > { %s326_s16 = sadd.s32 4294967295, %s363_s15   ;;  %p330_p0 = scmp.ge.s32.totalorder %s363_s15, 1  ;;  %s363_s15 = sphi %s392_s15, %s14_s15  }
   0x2   : > { %p163_p1 = scmp.lt.s32.totalorder %s363_s15, 3 }
   0x4   : > { %p164_p2 = pnand %p330_p0, %p163_p1 }
   0x5   : > { %v205_v0 = vld [vmem:[%s422_s1] sm:$0xf] (!%p164_p2)  ;;  %vm218_vm0 = vcmask (!%p164_p2), 1041408   ;;  %s331_s19 = sshll.u32 (!%p164_p2), %s326_s16, 1  ;;  %v365_v1 = vmov (!%p164_p2), 0.0   ;;  %vm366_vm1 = vmmov (!%p164_p2), 0  }
   0x6   : > { %167 = sbr.rel (%p164_p2) target bundleno = 238 (0xee), region = 36  ;;  %341 = vmatprep.subr.bf16.mxu0 (!%p164_p2), %v365_v1  ;;  %v206_v2 = vpack.c.bf16 (!%p164_p2), %v205_v0, %v205_v0  ;;  %343 = vmatprep.mubr.msk.bf16.mxu0 (!%p164_p2), %vm366_vm1, %v365_v1  ;;  %p190_p3 = scmp.lt.s32.totalorder (!%p164_p2), %s331_s19, 3  ;;  %vm214_vm2 = vcmask (!%p164_p2), 31744   ;;  %v335_v7 = vld [vmem:[%s423_s2] ss:$0 sm:$0xff] (!%p164_p2)  ;;  %vm267_vm3 = vcmask (!%p164_p2), 261120  }
   0x7   : > { %v263_v9 = vld [vmem:[%s424_s3] sm:$0xff] (!%p164_p2)  ;;  %v264_v13 = vld [vmem:[%s424_s3 + $0x8] sm:$0xff] (!%p164_p2) }
   0x8   : > { %v220_v3 = vsel (!%p164_p2), %vm218_vm0, %v206_v2, 0 }
   0x9   : > { %342 = vmatpush3.bf16.msra.mxu0 (!%p164_p2), %v220_v3 }
   0xd   : > { %s427_s19 = smov (!%p190_p3, %s331_s19), 3 }
   0xe   : > { %s332_s20 = sshll.u32 %s427_s19, 3 }
   0xf   : > { %s193_s23 = scalar_lea.vmem %s421_s0, %s332_s20  ;;  %s199_s30 = scalar_lea.vmem %s425_s4, %s332_s20 }
  0x10   : > { %v202_v4 = vld [vmem:[%s193_s23] sm:$0xff]  ;;  %v203_v5 = vld [vmem:[%s193_s23 + $0x8] sm:$0xff] }
  0x11   : > { %v204_v6 = vpack.c.bf16 %v203_v5, %v202_v4 }
  0x13   : > { %344 = vmatmul.mubr.msk.bf16.vlgmr.msra.gmra.mrb[0].mxu0 %vm214_vm2, %v204_v6 }
  0xe6   : > { %v256_v8 = vpop.f32.mrb[0].mxu0 }
  0xe7   : > { %v257_v10 = vadd.f32 %v335_v7, %v256_v8  ;;  %v345_v11 = vpop.f32.mrb[1].mxu0 }
  0xe8   : > { %v259_v12 = vpop.f32.mrb[2].mxu0 }
  0xe9   : > { %v265_v14 = vadd.f32 %v263_v9, %v257_v10  ;;  %v260_v15 = vadd.f32 %v335_v7, %v259_v12  ;;  %v346_v16 = vpop.f32.mrb[3].mxu0 }
  0xeb   : > { %268 = vst.msk [vmem:[%s199_s30] sm:$0xff] %vm267_vm3, %v265_v14  ;;  %v266_v17 = vadd.f32 %v264_v13, %v260_v15 }
  0xed   : > { %269 = vst.msk [vmem:[%s199_s30 + $0x8] sm:$0xff] %vm267_vm3, %v266_v17 }
  0xee PF: > { %s14_s15 = sadd.s32 1, %s363_s15  }
  0xef   : > { %p11_p4 = scmp.ge.s32.totalorder %s14_s15, 4  }
  0xf1   :  { %13 = sbr.rel (!%p11_p4) target bundleno = 1 (0x1), region = 66 }

// kernel: transformer_ae_forward.13
= control target key start
LH: loop header
LB: loop body
LE: loop exit
PB: predicated region body
PF: predicated region fallthrough
CT: control target
= control target key end

     0   :  { %s1410_s24 = smov 0   ;;  %s1581_s0 = inlined_call_operand.vmem [shape: f32[32,32], index: 0, kind: input, shape index: {}]   ;;  %s1582_s1 = inlined_call_operand.vmem [shape: f32[32,96], index: 1, kind: input, shape index: {}]   ;;  %s1583_s2 = inlined_call_operand.vmem [shape: f32[1,96], index: 2, kind: input, shape index: {}]   ;;  %s1584_s3 = inlined_call_operand.vmem [shape: f32[32,32], index: 3, kind: input, shape index: {}]   ;;  %s1585_s4 = inlined_call_operand.vmem [shape: f32[1,32], index: 4, kind: input, shape index: {}]   ;;  %s1586_s5 = inlined_call_operand.vmem [shape: f32[1,32], index: 5, kind: input, shape index: {}]   ;;  %s1587_s6 = inlined_call_operand.vmem [shape: f32[1,32], index: 6, kind: input, shape index: {}]   ;;  %s1588_s7 = inlined_call_operand.vmem [shape: f32[32,32], index: 7, kind: output, shape index: {}]  }
   0x1 LB: > { %s1157_s25 = sadd.s32 4294967295, %s1355_s24   ;;  %p1161_p0 = scmp.ge.s32.totalorder %s1355_s24, 1  ;;  %s1355_s24 = sphi %s1410_s24, %s17_s24  }
   0x2   : > { %p238_p1 = scmp.lt.s32.totalorder %s1355_s24, 3 }
   0x4   : > { %p239_p2 = pnand %p1161_p0, %p238_p1 }
   0x5   : > { %v286_v0 = vld [vmem:[%s1582_s1] sm:$0xff] (!%p239_p2)  ;;  %v287_v1 = vld [vmem:[%s1582_s1 + $0x8] sm:$0xff] (!%p239_p2)  ;;  %v288_v2 = vld [vmem:[%s1582_s1 + $0x10] sm:$0xff] (!%p239_p2)  ;;  %s1162_s9 = sshll.u32 (!%p239_p2), %s1157_s25, 1  ;;  %v1357_v3 = vmov (!%p239_p2), 0.0   ;;  %vm1358_vm0 = vmmov (!%p239_p2), 0  }
   0x6   : > { %242 = sbr.rel (%p239_p2) target bundleno = 2950 (0xb86), region = 48  ;;  %1212 = vmatprep.subr.bf16.mxu0 (!%p239_p2), %v1357_v3  ;;  %v290_v4 = vpack.c.bf16 (!%p239_p2), %v287_v1, %v286_v0  ;;  %v289_v5 = vld [vmem:[%s1582_s1 + $0x18] sm:$0xff] (!%p239_p2)  ;;  %1216 = vmatprep.mubr.msk.bf16.mxu0 (!%p239_p2), %vm1358_vm0, %v1357_v3  ;;  %p271_p3 = scmp.lt.s32.totalorder (!%p239_p2), %s1162_s9, 3  ;;  %vm299_vm1 = vcmask (!%p239_p2), 261120   ;;  %v1166_v10 = vld [vmem:[%s1583_s2] ss:$0 sm:$0xff] (!%p239_p2) }
   0x7   : > { %1220 = vmatprep.subr.bf16.mxu1 (!%p239_p2), %v1357_v3  ;;  %1222 = vmatprep.mubr.msk.bf16.mxu1 (!%p239_p2), %vm1358_vm0, %v1357_v3  ;;  %v291_v6 = vpack.c.bf16 (!%p239_p2), %v289_v5, %v288_v2  ;;  %s1359_s18 = smov (!%p239_p2), 120   ;;  %s1360_s19 = smov (!%p239_p2), 96   ;;  %vm352_vm2 = vcmask (!%p239_p2), 64512   ;;  %vm402_vm3 = vcmask (!%p239_p2), 130048   ;;  %vm603_vm4 = vcmask (!%p239_p2), 1043456  }
   0x8   : > { %1213 = vmatpush3.bf16.msra.mxu0 (!%p239_p2), %v290_v4  ;;  %s1361_s20 = smov (!%p239_p2), 88   ;;  %s1362_s21 = smov (!%p239_p2), 56  }
   0x9   : > { %1214 = vmatprep.subr.bf16.mxu0 (!%p239_p2), %v1357_v3  ;;  %s1363_s22 = smov (!%p239_p2), 64   ;;  %s1364_s23 = smov (!%p239_p2), 80  }
   0xa   : > { %s1365_s25 = smov (!%p239_p2), 112   ;;  %s1366_s30 = smov (!%p239_p2), 72  }
   0xb   : > { %s1367_s8 = smov (!%p239_p2), 48   ;;  %s1368_s10 = smov (!%p239_p2), 104  }
   0xc   : > { %1215 = vmatpush3.bf16.msra.mxu0 (!%p239_p2), %v291_v6  ;;  %s1369_s14 = smov (!%p239_p2), 40  }
   0xd   : > { %s1590_s9 = smov (!%p271_p3, %s1162_s9), 3  ;;  %1226 = vmatprep.subr.bf16.mxu0 %v1357_v3 }
   0xe   : > { %s1163_s12 = sshll.u32 %s1590_s9, 3 }
   0xf   : > { %s274_s15 = scalar_lea.vmem %s1581_s0, %s1163_s12  ;;  %s280_s26 = scalar_lea.vmem %s1588_s7, %s1163_s12 }
  0x10   : > { %v1445_v7 = vld [vmem:[%s274_s15] sm:$0xff]  ;;  %v1447_v8 = vld [vmem:[%s274_s15 + $0x8] sm:$0xff] }
  0x11   : > { %v285_v9 = vpack.c.bf16 %v1447_v8, %v1445_v7 }
  0x13   : > { %1217 = vmatmul.mubr.msk.bf16.vlgmr.msra.gmra.mrb[0].mxu0 %vm299_vm1, %v285_v9 }
  0x14   : > { %1228 = vmatprep.mubr.msk.bf16.mxu0 %vm1358_vm0, %v1357_v3 }
  0xe6   : > { %v337_v11 = vpop.f32.mrb[0].mxu0 }
  0xe7   : > { %v1218_v12 = vpop.f32.mrb[1].mxu0  ;;  %v338_v14 = vadd.f32 %v1166_v10, %v337_v11 }
  0xe8   : > { %v340_v13 = vpop.f32.mrb[2].mxu0 }
  0xe9   : > { %v341_v15 = vadd.f32 %v1166_v10, %v340_v13  ;;  %v1219_v16 = vpop.f32.mrb[3].mxu0 }
  0xea   : > { %v345_v16 = vld [vmem:[%s1584_s3 + $0x8] sm:$0xff] }
  0xeb   : > { %v1458_v17 = vpack.c.bf16 %v341_v15, %v338_v14  ;;  %v344_v14 = vld [vmem:[%s1584_s3] sm:$0xff] }
  0xec   : > { %v473_v15 = vpack.c.bf16 %v344_v14, %v344_v14 }
  0xed   : > { %475 = vrot.lane.b32.xlu1 %v1458_v17, %s1359_s18  ;;  %350 = vrot.lane.b32.xlu0 %v1458_v17, %s1360_s19 }
  0xf1   : > { %477 = vrot.lane.b32.xlu0 %v1458_v17, %s1361_s20 }
 0x15f   : > { %v351_v18 = vpop.permute.xlu0 %350  ;;  %v476_v22 = vpop.permute.xlu1 %475 }
 0x160   : > { %v357_v19 = vsel %vm352_vm2, %v351_v18, 0  ;;  %v652_v18 = vsel %vm603_vm4, %v473_v15, 0 }
 0x161   : > { %1221 = vmatpush3.bf16.xpose.msra.mxu1 %v357_v19  ;;  %v598_v19 = vpack.c.bf16 %v345_v16, %v345_v16 }
 0x162   : > { %1232 = vmatprep.subr.bf16.mxu1 %v1357_v3 }
 0x163   : > { %v478_v20 = vpop.permute.xlu0 %477 }
 0x164   : > { %v483_v21 = vsel %vm352_vm2, %v478_v20, 0  ;;  %v605_v20 = vsel %vm603_vm4, %v598_v19, 0 }
 0x168   : > { %1223 = vmatmul.mubr.msk.bf16.vlgmr.msra.gmra.mrb[0].mxu1 %vm352_vm2, %v1458_v17 }
 0x169   : > { %1233 = vmatpush3.bf16.xpose.msra.mxu1 %v483_v21  ;;  %1234 = vmatprep.mubr.msk.bf16.mxu1 %vm1358_vm0, %v1357_v3 }
 0x16a   : > { %1244 = vmatprep.subr.bf16.mxu1 %v1357_v3 }
 0x170   : > { %1235 = vmatmul.mubr.msk.bf16.vlgmr.msra.gmra.mrb[4].mxu1 %vm352_vm2, %v476_v22 }
 0x171   : > { %1246 = vmatprep.mubr.msk.bf16.mxu1 %vm1358_vm0, %v1357_v3  ;;  %1245 = vmatpush3.bf16.msra.mxu1 %v605_v20 }
 0x172   : > { %1256 = vmatprep.subr.bf16.mxu1 %v1357_v3 }
 0x23b   : > { %v393_v23 = vpop.f32.mrb[0].mxu1 }
 0x23c   : > { %v400_v24 = vmul.f32 0.35355338, %v393_v23  ;;  %v1224_v25 = vpop.f32.mrb[1].mxu1 }
 0x23d   : > { %v396_v26 = vpop.f32.mrb[2].mxu1 }
 0x23e   : > { %v401_v27 = vmul.f32 0.35355338, %v396_v26  ;;  %v1225_v28 = vpop.f32.mrb[3].mxu1  ;;  %v403_v29 = vsel %vm402_vm3, %v400_v24, -inf }
 0x23f   : > { %404 = vmax.xlane.f32.xlu1 %v403_v29 }
 0x240   : > { %v406_v30 = vsel %vm402_vm3, %v401_v27, -inf }
 0x241   : > { %407 = vmax.xlane.f32.xlu0 %v406_v30 }
 0x243   : > { %v519_v31 = vpop.f32.mrb[4].mxu1 }
 0x244   : > { %v526_v32 = vmul.f32 0.35355338, %v519_v31  ;;  %v1236_v33 = vpop.f32.mrb[5].mxu1 }
 0x245   : > { %v522_v34 = vpop.f32.mrb[6].mxu1 }
 0x246   : > { %v527_v35 = vmul.f32 0.35355338, %v522_v34  ;;  %v1237_v36 = vpop.f32.mrb[7].mxu1  ;;  %v528_v37 = vsel %vm402_vm3, %v526_v32, -inf }
 0x247   : > { %529 = vmax.xlane.f32.xlu0 %v528_v37 }
 0x248   : > { %v531_v38 = vsel %vm402_vm3, %v527_v35, -inf }
 0x249   : > { %532 = vmax.xlane.f32.xlu1 %v531_v38 }
 0x2cc   : > { %v405_v39 = vpop.xlane.xlu1 %404 }
 0x2cd   : > { %v409_v40 = vsub.f32 %v400_v24, %v405_v39 }
 0x2ce   : > { %v408_v41 = vpop.xlane.xlu0 %407 }
 0x2cf   : > { %v411_v42 = vmul.f32 1.442695, %v409_v40  ;;  %v410_v43 = vsub.f32 %v401_v27, %v408_v41 }
 0x2d1   : > { %1313 = vpow2.f32 %v411_v42  ;;  %v413_v44 = vmul.f32 1.442695, %v410_v43 }
 0x2d3   : > { %1315 = vpow2.f32 %v413_v44 }
 0x2d4   : > { %v530_v45 = vpop.xlane.xlu0 %529 }
 0x2d5   : > { %v534_v46 = vsub.f32 %v526_v32, %v530_v45 }
 0x2d6   : > { %v533_v47 = vpop.xlane.xlu1 %532 }
 0x2d7   : > { %v536_v48 = vmul.f32 1.442695, %v534_v46  ;;  %v535_v49 = vsub.f32 %v527_v35, %v533_v47 }
 0x2d9   : > { %1317 = vpow2.f32 %v536_v48  ;;  %v538_v50 = vmul.f32 1.442695, %v535_v49 }
 0x2db   : > { %v1314_v51 = vpop.eup %1313  ;;  %1319 = vpow2.f32 %v538_v50 }
 0x2dc   : > { %v415_v52 = vsel %vm402_vm3, %v1314_v51, 0.0 }
 0x2dd   : > { %v1316_v53 = vpop.eup %1315  ;;  %416 = vadd.xlane.f32.xlu0 %v415_v52 }
 0x2de   : > { %v418_v54 = vsel %vm402_vm3, %v1316_v53, 0.0 }
 0x2df   : > { %419 = vadd.xlane.f32.xlu1 %v418_v54 }
 0x2e3   : > { %v1318_v55 = vpop.eup %1317 }
 0x2e4   : > { %v540_v56 = vsel %vm402_vm3, %v1318_v55, 0.0 }
 0x2e5   : > { %v1320_v57 = vpop.eup %1319  ;;  %541 = vadd.xlane.f32.xlu0 %v540_v56 }
 0x2e6   : > { %v543_v58 = vsel %vm402_vm3, %v1320_v57, 0.0 }
 0x2e7   : > { %544 = vadd.xlane.f32.xlu1 %v543_v58 }
 0x2f8   : > { %551 = vrot.lane.b32.xlu1 %v1458_v17, %s1362_s21 }
 0x2fb   : > { %426 = vrot.lane.b32.xlu0 %v1458_v17, %s1363_s22 }
 0x2fc   : > { %697 = vrot.lane.b32.xlu1 %v1458_v17, %s1364_s23 }
 0x2ff   : > { %695 = vrot.lane.b32.xlu0 %v1458_v17, %s1365_s25 }
 0x36a   : > { %v417_v59 = vpop.xlane.xlu0 %416 }
 0x36b   : > { %1321 = vrcp.f32 %v417_v59 }
 0x36c   : > { %v420_v60 = vpop.xlane.xlu1 %419 }
 0x36d   : > { %1323 = vrcp.f32 %v420_v60 }
 0x372   : > { %v542_v61 = vpop.xlane.xlu0 %541 }
 0x373   : > { %1325 = vrcp.f32 %v542_v61 }
 0x374   : > { %v545_v62 = vpop.xlane.xlu1 %544 }
 0x375   : > { %v1322_v63 = vpop.eup %1321  ;;  %1327 = vrcp.f32 %v545_v62 }
 0x376   : > { %v427_v0 = vpop.permute.xlu0 %426  ;;  %v423_v2 = vmul.f32 %v1322_v63, %v1314_v51 }
 0x377   : > { %v1324_v1 = vpop.eup %1323  ;;  %1227 = vmatpush3.bf16.msra.mxu0 %v427_v0 }
 0x378   : > { %v424_v4 = vmul.f32 %v1324_v1, %v1316_v53  ;;  %1238 = vmatprep.subr.bf16.mxu0 %v1357_v3  ;;  %v552_v6 = vpop.permute.xlu1 %551 }
 0x37a   : > { %v425_v5 = vpack.c.bf16 %v424_v4, %v423_v2  ;;  %v696_v33 = vpop.permute.xlu0 %695 }
 0x37c   : > { %1229 = vmatmul.mubr.msk.bf16.vlgmr.msra.gmra.mrb[4].mxu0 %vm402_vm3, %v425_v5  ;;  %v698_v28 = vpop.permute.xlu1 %697 }
 0x37d   : > { %v1326_v9 = vpop.eup %1325  ;;  %1239 = vmatpush3.bf16.msra.mxu0 %v552_v6  ;;  %1240 = vmatprep.mubr.msk.bf16.mxu0 %vm1358_vm0, %v1357_v3  ;;  %v703_v32 = vsel %vm352_vm2, %v698_v28, 0 }
 0x37e   : > { %1250 = vmatprep.subr.bf16.mxu0 %v1357_v3  ;;  %v548_v11 = vmul.f32 %v1326_v9, %v1318_v55 }
 0x37f   : > { %v1328_v10 = vpop.eup %1327 }
 0x380   : > { %v549_v12 = vmul.f32 %v1328_v10, %v1320_v57 }
 0x382   : > { %v550_v13 = vpack.c.bf16 %v549_v12, %v548_v11  ;;  %v346_v12 = vld [vmem:[%s1584_s3 + $0x10] sm:$0xff] }
 0x384   : > { %1241 = vmatmul.mubr.msk.bf16.vlgmr.msra.gmra.mrb[8].mxu0 %vm402_vm3, %v550_v13  ;;  %v818_v13 = vpack.c.bf16 %v346_v12, %v346_v12 }
 0x385   : > { %1252 = vmatprep.mubr.msk.bf16.mxu0 %vm1358_vm0, %v1357_v3  ;;  %1251 = vmatpush3.bf16.msra.mxu0 %v652_v18 }
 0x386   : > { %1262 = vmatprep.subr.bf16.mxu0 %v1357_v3  ;;  %v824_v14 = vsel %vm603_vm4, %v818_v13, 0 }
 0x44f   : > { %v466_v21 = vpop.f32.mrb[4].mxu0 }
 0x450   : > { %v1230_v22 = vpop.f32.mrb[5].mxu0 }
 0x451   : > { %v469_v23 = vpop.f32.mrb[6].mxu0 }
 0x452   : > { %v474_v24 = vpack.c.bf16 %v469_v23, %v466_v21  ;;  %v1231_v25 = vpop.f32.mrb[7].mxu0 }
 0x454   : > { %1253 = vmatmul.mubr.msk.bf16.vlgmr.msra.gmra.mrb[12].mxu0 %vm352_vm2, %v474_v24 }
 0x455   : > { %1264 = vmatprep.mubr.msk.bf16.mxu0 %vm1358_vm0, %v1357_v3 }
 0x457   : > { %v591_v26 = vpop.f32.mrb[8].mxu0 }
 0x458   : > { %v1242_v27 = vpop.f32.mrb[9].mxu0 }
 0x459   : > { %v594_v29 = vpop.f32.mrb[10].mxu0 }
 0x45a   : > { %v599_v30 = vpack.c.bf16 %v594_v29, %v591_v26  ;;  %v1243_v31 = vpop.f32.mrb[11].mxu0 }
 0x45c   : > { %1247 = vmatmul.mubr.msk.bf16.vlgmr.msra.gmra.mrb[8].mxu1 %vm352_vm2, %v599_v30 }
 0x45d   : > { %1257 = vmatpush3.bf16.xpose.msra.mxu1 %v703_v32  ;;  %1258 = vmatprep.mubr.msk.bf16.mxu1 %vm1358_vm0, %v1357_v3 }
 0x45e   : > { %1268 = vmatprep.subr.bf16.mxu1 %v1357_v3 }
 0x464   : > { %1259 = vmatmul.mubr.msk.bf16.vlgmr.msra.gmra.mrb[12].mxu1 %vm352_vm2, %v696_v33 }
 0x465   : > { %1270 = vmatprep.mubr.msk.bf16.mxu1 %vm1358_vm0, %v1357_v3  ;;  %1269 = vmatpush3.bf16.msra.mxu1 %v824_v14 }
 0x466   : > { %1280 = vmatprep.subr.bf16.mxu1 %v1357_v3 }
 0x527   : > { %v688_v34 = vpop.f32.mrb[12].mxu0 }
 0x528   : > { %v1254_v35 = vpop.f32.mrb[13].mxu0 }
 0x529   : > { %v691_v36 = vpop.f32.mrb[14].mxu0 }
 0x52a   : > { %v1255_v37 = vpop.f32.mrb[15].mxu0 }
 0x52f   : > { %v641_v38 = vpop.f32.mrb[8].mxu1 }
 0x530   : > { %v1515_v39 = vadd.f32 %v688_v34, %v641_v38  ;;  %v1248_v40 = vpop.f32.mrb[9].mxu1 }
 0x531   : > { %v644_v41 = vpop.f32.mrb[10].mxu1 }
 0x532   : > { %v1517_v42 = vadd.f32 %v691_v36, %v644_v41  ;;  %v1249_v43 = vpop.f32.mrb[11].mxu1 }
 0x537   : > { %v739_v44 = vpop.f32.mrb[12].mxu1 }
 0x538   : > { %v746_v45 = vmul.f32 0.35355338, %v739_v44  ;;  %v1260_v46 = vpop.f32.mrb[13].mxu1 }
 0x539   : > { %v742_v47 = vpop.f32.mrb[14].mxu1 }
 0x53a   : > { %v747_v48 = vmul.f32 0.35355338, %v742_v47  ;;  %v1261_v49 = vpop.f32.mrb[15].mxu1  ;;  %v748_v50 = vsel %vm402_vm3, %v746_v45, -inf }
 0x53b   : > { %749 = vmax.xlane.f32.xlu1 %v748_v50 }
 0x53c   : > { %v751_v51 = vsel %vm402_vm3, %v747_v48, -inf }
 0x53d   : > { %752 = vmax.xlane.f32.xlu0 %v751_v51 }
 0x5c8   : > { %v750_v52 = vpop.xlane.xlu1 %749 }
 0x5c9   : > { %v754_v53 = vsub.f32 %v746_v45, %v750_v52 }
 0x5ca   : > { %v753_v54 = vpop.xlane.xlu0 %752 }
 0x5cb   : > { %v756_v55 = vmul.f32 1.442695, %v754_v53  ;;  %v755_v56 = vsub.f32 %v747_v48, %v753_v54 }
 0x5cd   : > { %1329 = vpow2.f32 %v756_v55  ;;  %v758_v57 = vmul.f32 1.442695, %v755_v56 }
 0x5cf   : > { %1331 = vpow2.f32 %v758_v57 }
 0x5d7   : > { %v1330_v58 = vpop.eup %1329 }
 0x5d8   : > { %v760_v59 = vsel %vm402_vm3, %v1330_v58, 0.0 }
 0x5d9   : > { %v1332_v60 = vpop.eup %1331  ;;  %761 = vadd.xlane.f32.xlu0 %v760_v59 }
 0x5da   : > { %v763_v61 = vsel %vm402_vm3, %v1332_v60, 0.0 }
 0x5db   : > { %764 = vadd.xlane.f32.xlu1 %v763_v61 }
 0x5ec   : > { %871 = vrot.lane.b32.xlu1 %v1458_v17, %s1366_s30 }
 0x5ef   : > { %771 = vrot.lane.b32.xlu0 %v1458_v17, %s1367_s8 }
 0x5f0   : > { %869 = vrot.lane.b32.xlu1 %v1458_v17, %s1368_s10 }
 0x666   : > { %v762_v62 = vpop.xlane.xlu0 %761 }
 0x667   : > { %1333 = vrcp.f32 %v762_v62 }
 0x668   : > { %v765_v63 = vpop.xlane.xlu1 %764 }
 0x669   : > { %1335 = vrcp.f32 %v765_v63 }
 0x66a   : > { %v772_v0 = vpop.permute.xlu0 %771 }
 0x66b   : > { %1263 = vmatpush3.bf16.msra.mxu0 %v772_v0 }
 0x66c   : > { %1274 = vmatprep.subr.bf16.mxu0 %v1357_v3  ;;  %v872_v6 = vpop.permute.xlu1 %871 }
 0x66d   : > { %v877_v10 = vsel %vm352_vm2, %v872_v6, 0 }
 0x670   : > { %v870_v11 = vpop.permute.xlu1 %869 }
 0x671   : > { %v1334_v1 = vpop.eup %1333 }
 0x672   : > { %v768_v4 = vmul.f32 %v1334_v1, %v1330_v58 }
 0x673   : > { %v1336_v2 = vpop.eup %1335 }
 0x674   : > { %v769_v5 = vmul.f32 %v1336_v2, %v1332_v60  ;;  %v1180_v60 = vld [vmem:[%s1585_s4] ss:$0 sm:$0xff] }
 0x676   : > { %v770_v9 = vpack.c.bf16 %v769_v5, %v768_v4 }
 0x678   : > { %1265 = vmatmul.mubr.msk.bf16.vlgmr.msra.gmra.mrb[16].mxu0 %vm402_vm3, %v770_v9 }
 0x679   : > { %1275 = vmatpush3.bf16.xpose.msra.mxu0 %v877_v10  ;;  %1276 = vmatprep.mubr.msk.bf16.mxu0 %vm1358_vm0, %v1357_v3 }
 0x67a   : > { %1286 = vmatprep.subr.bf16.mxu0 %v1357_v3 }
 0x680   : > { %1277 = vmatmul.mubr.msk.bf16.vlgmr.msra.gmra.mrb[20].mxu0 %vm352_vm2, %v870_v11 }
 0x681   : > { %1288 = vmatprep.mubr.msk.bf16.mxu0 %vm1358_vm0, %v1357_v3 }
 0x74b   : > { %v811_v15 = vpop.f32.mrb[16].mxu0 }
 0x74c   : > { %v1266_v16 = vpop.f32.mrb[17].mxu0 }
 0x74d   : > { %v814_v18 = vpop.f32.mrb[18].mxu0 }
 0x74e   : > { %v819_v19 = vpack.c.bf16 %v814_v18, %v811_v15  ;;  %v1267_v20 = vpop.f32.mrb[19].mxu0 }
 0x750   : > { %1271 = vmatmul.mubr.msk.bf16.vlgmr.msra.gmra.mrb[16].mxu1 %vm352_vm2, %v819_v19 }
 0x751   : > { %1282 = vmatprep.mubr.msk.bf16.mxu1 %vm1358_vm0, %v1357_v3 }
 0x753   : > { %v913_v21 = vpop.f32.mrb[20].mxu0 }
 0x754   : > { %v920_v22 = vmul.f32 0.35355338, %v913_v21  ;;  %v1278_v23 = vpop.f32.mrb[21].mxu0 }
 0x755   : > { %v916_v24 = vpop.f32.mrb[22].mxu0 }
 0x756   : > { %v921_v25 = vmul.f32 0.35355338, %v916_v24  ;;  %v1279_v26 = vpop.f32.mrb[23].mxu0  ;;  %v922_v27 = vsel %vm402_vm3, %v920_v22, -inf }
 0x757   : > { %923 = vmax.xlane.f32.xlu0 %v922_v27  ;;  %v1181_v27 = vld [vmem:[%s1586_s5] ss:$0 sm:$0xff] }
 0x758   : > { %v925_v28 = vsel %vm402_vm3, %v921_v25, -inf }
 0x759   : > { %926 = vmax.xlane.f32.xlu1 %v925_v28 }
 0x76a   : > { %945 = vrot.lane.b32.xlu1 %v1458_v17, %s1369_s14 }
 0x7e4   : > { %v924_v29 = vpop.xlane.xlu0 %923 }
 0x7e5   : > { %v928_v30 = vsub.f32 %v920_v22, %v924_v29  ;;  %v1182_v29 = vld [vmem:[%s1587_s6] ss:$0 sm:$0xff] }
 0x7e6   : > { %v927_v31 = vpop.xlane.xlu1 %926 }
 0x7e7   : > { %v930_v32 = vmul.f32 1.442695, %v928_v30  ;;  %v929_v3 = vsub.f32 %v921_v25, %v927_v31 }
 0x7e9   : > { %1337 = vpow2.f32 %v930_v32  ;;  %v932_v33 = vmul.f32 1.442695, %v929_v3 }
 0x7ea   : > { %v946_v34 = vpop.permute.xlu1 %945 }
 0x7eb   : > { %1339 = vpow2.f32 %v932_v33  ;;  %1281 = vmatpush3.bf16.msra.mxu1 %v946_v34 }
 0x7f3   : > { %v1338_v35 = vpop.eup %1337 }
 0x7f4   : > { %v934_v36 = vsel %vm402_vm3, %v1338_v35, 0.0 }
 0x7f5   : > { %v1340_v37 = vpop.eup %1339  ;;  %935 = vadd.xlane.f32.xlu0 %v934_v36 }
 0x7f6   : > { %v937_v38 = vsel %vm402_vm3, %v1340_v37, 0.0 }
 0x7f9   : > { %938 = vadd.xlane.f32.xlu0 %v937_v38 }
 0x823   : > { %v860_v40 = vpop.f32.mrb[16].mxu1 }
 0x824   : > { %v867_v17 = vadd.f32 %v860_v40, %v1515_v39  ;;  %v1272_v41 = vpop.f32.mrb[17].mxu1  ;;  %v347_v39 = vld [vmem:[%s1584_s3 + $0x18] sm:$0xff] }
 0x825   : > { %v863_v43 = vpop.f32.mrb[18].mxu1  ;;  %v992_v53 = vpack.c.bf16 %v347_v39, %v347_v39 }
 0x826   : > { %v868_v44 = vadd.f32 %v863_v43, %v1517_v42  ;;  %v1273_v45 = vpop.f32.mrb[19].mxu1 }
 0x827   : > { %v998_v54 = vsel %vm603_vm4, %v992_v53, 0 }
 0x828   : > { %1287 = vmatpush3.bf16.msra.mxu0 %v998_v54 }
 0x882   : > { %v936_v46 = vpop.xlane.xlu0 %935 }
 0x883   : > { %1341 = vrcp.f32 %v936_v46 }
 0x886   : > { %v939_v47 = vpop.xlane.xlu0 %938 }
 0x887   : > { %1343 = vrcp.f32 %v939_v47 }
 0x88d   : > { %v1342_v48 = vpop.eup %1341 }
 0x88e   : > { %v942_v50 = vmul.f32 %v1342_v48, %v1338_v35 }
 0x891   : > { %v1344_v49 = vpop.eup %1343 }
 0x892   : > { %v943_v51 = vmul.f32 %v1344_v49, %v1340_v37 }
 0x894   : > { %v944_v52 = vpack.c.bf16 %v943_v51, %v942_v50 }
 0x896   : > { %1283 = vmatmul.mubr.msk.bf16.vlgmr.msra.gmra.mrb[20].mxu1 %vm402_vm3, %v944_v52 }
 0x969   : > { %v985_v42 = vpop.f32.mrb[20].mxu1 }
 0x96a   : > { %v1284_v55 = vpop.f32.mrb[21].mxu1 }
 0x96b   : > { %v988_v56 = vpop.f32.mrb[22].mxu1 }
 0x96c   : > { %v993_v57 = vpack.c.bf16 %v988_v56, %v985_v42  ;;  %v1285_v58 = vpop.f32.mrb[23].mxu1 }
 0x96e   : > { %1289 = vmatmul.mubr.msk.bf16.vlgmr.msra.gmra.mrb[24].mxu0 %vm352_vm2, %v993_v57 }
 0xa41   : > { %v1034_v59 = vpop.f32.mrb[24].mxu0 }
 0xa42   : > { %v1041_v61 = vadd.f32 %v1034_v59, %v867_v17  ;;  %v1290_v62 = vpop.f32.mrb[25].mxu0 }
 0xa43   : > { %v1037_v63 = vpop.f32.mrb[26].mxu0 }
 0xa44   : > { %v1050_v0 = vadd.f32 %v1180_v60, %v1041_v61  ;;  %v1042_v1 = vadd.f32 %v1037_v63, %v868_v44  ;;  %v1291_v2 = vpop.f32.mrb[27].mxu0 }
 0xa46   : > { %v1051_v4 = vadd.f32 %v1180_v60, %v1042_v1  ;;  %v1052_v5 = vadd.f32 %v1050_v0, %v1445_v7 }
 0xa48   : > { %v1056_v6 = vsel %vm299_vm1, %v1052_v5, 0.0  ;;  %v1053_v9 = vadd.f32 %v1051_v4, %v1447_v8 }
 0xa49   : > { %1057 = vadd.xlane.f32.xlu0 %v1056_v6 }
 0xa4a   : > { %v1059_v10 = vsel %vm299_vm1, %v1053_v9, 0.0 }
 0xa4d   : > { %1060 = vadd.xlane.f32.xlu0 %v1059_v10 }
 0xad6   : > { %v1058_v11 = vpop.xlane.xlu0 %1057 }
 0xad7   : > { %v1063_v12 = vmul.f32 0.03125, %v1058_v11 }
 0xad9   : > { %v1065_v13 = vsub.f32 %v1052_v5, %v1063_v12 }
 0xada   : > { %v1061_v14 = vpop.xlane.xlu0 %1060 }
 0xadb   : > { %v1064_v15 = vmul.f32 0.03125, %v1061_v14  ;;  %v1067_v16 = vmul.f32 %v1065_v13, %v1065_v13 }
 0xadd   : > { %v1066_v18 = vsub.f32 %v1053_v9, %v1064_v15  ;;  %v1069_v19 = vsel %vm299_vm1, %v1067_v16, 0.0 }
 0xade   : > { %1070 = vadd.xlane.f32.xlu0 %v1069_v19 }
 0xadf   : > { %v1068_v20 = vmul.f32 %v1066_v18, %v1066_v18 }
 0xae1   : > { %v1072_v7 = vsel %vm299_vm1, %v1068_v20, 0.0 }
 0xae2   : > { %1073 = vadd.xlane.f32.xlu0 %v1072_v7 }
 0xb6b   : > { %v1071_v8 = vpop.xlane.xlu0 %1070 }
 0xb6c   : > { %v1075_v21 = vmul.f32 0.03125, %v1071_v8 }
 0xb6e   : > { %v1077_v22 = vadd.f32 1e-05, %v1075_v21 }
 0xb6f   : > { %v1074_v23 = vpop.xlane.xlu0 %1073 }
 0xb70   : > { %1345 = vrsqrt.f32 %v1077_v22  ;;  %v1076_v24 = vmul.f32 0.03125, %v1074_v23 }
 0xb72   : > { %v1078_v25 = vadd.f32 1e-05, %v1076_v24 }
 0xb74   : > { %1347 = vrsqrt.f32 %v1078_v25 }
 0xb7a   : > { %v1346_v26 = vpop.eup %1345 }
 0xb7b   : > { %v1081_v28 = vmul.f32 %v1346_v26, %v1065_v13 }
 0xb7d   : > { %v1089_v30 = vmul.f32 %v1181_v27, %v1081_v28 }
 0xb7e   : > { %v1348_v31 = vpop.eup %1347 }
 0xb7f   : > { %v1097_v32 = vadd.f32 %v1182_v29, %v1089_v30  ;;  %v1082_v3 = vmul.f32 %v1348_v31, %v1066_v18 }
 0xb81   : > { %1099 = vst.msk [vmem:[%s280_s26] sm:$0xff] %vm299_vm1, %v1097_v32  ;;  %v1090_v33 = vmul.f32 %v1181_v27, %v1082_v3 }
 0xb83   : > { %v1098_v34 = vadd.f32 %v1182_v29, %v1090_v33 }
 0xb85   : > { %1100 = vst.msk [vmem:[%s280_s26 + $0x8] sm:$0xff] %vm299_vm1, %v1098_v34 }
 0xb86 PF: > { %s17_s24 = sadd.s32 1, %s1355_s24  }
 0xb87   : > { %p14_p4 = scmp.ge.s32.totalorder %s17_s24, 4  }
 0xb89   :  { %16 = sbr.rel (!%p14_p4) target bundleno = 1 (0x1), region = 78 }

// kernel: transformer_ae_forward.14
= control target key start
LH: loop header
LB: loop body
LE: loop exit
PB: predicated region body
PF: predicated region fallthrough
CT: control target
= control target key end

     0   :  { %s625_s24 = smov 0   ;;  %s704_s0 = inlined_call_operand.vmem [shape: f32[32,32], index: 0, kind: input, shape index: {}]   ;;  %s705_s1 = inlined_call_operand.vmem [shape: f32[32,64], index: 1, kind: input, shape index: {}]   ;;  %s706_s2 = inlined_call_operand.vmem [shape: f32[1,64], index: 2, kind: input, shape index: {}]   ;;  %s707_s3 = inlined_call_operand.vmem [shape: f32[64,32], index: 3, kind: input, shape index: {}]   ;;  %s708_s4 = inlined_call_operand.vmem [shape: f32[1,32], index: 4, kind: input, shape index: {}]   ;;  %s709_s5 = inlined_call_operand.vmem [shape: f32[1,32], index: 5, kind: input, shape index: {}]   ;;  %s710_s6 = inlined_call_operand.vmem [shape: f32[1,32], index: 6, kind: input, shape index: {}]   ;;  %s711_s7 = inlined_call_operand.vmem [shape: f32[32,32], index: 7, kind: output, shape index: {}]  }
   0x1 LB: > { %s516_s25 = sadd.s32 4294967295, %s581_s24   ;;  %p520_p0 = scmp.ge.s32.totalorder %s581_s24, 1  ;;  %s581_s24 = sphi %s625_s24, %s17_s24  }
   0x2   : > { %p238_p1 = scmp.lt.s32.totalorder %s581_s24, 3 }
   0x4   : > { %p239_p2 = pnand %p520_p0, %p238_p1 }
   0x5   : > { %v286_v0 = vld [vmem:[%s705_s1] sm:$0xff] (!%p239_p2)  ;;  %v287_v1 = vld [vmem:[%s705_s1 + $0x8] sm:$0xff] (!%p239_p2)  ;;  %v288_v2 = vld [vmem:[%s705_s1 + $0x10] sm:$0xff] (!%p239_p2)  ;;  %s521_s9 = sshll.u32 (!%p239_p2), %s516_s25, 1  ;;  %v583_v3 = vmov (!%p239_p2), 0.0   ;;  %vm584_vm0 = vmmov (!%p239_p2), 0  }
   0x6   : > { %242 = sbr.rel (%p239_p2) target bundleno = 773 (0x305), region = 48  ;;  %541 = vmatprep.subr.bf16.mxu0 (!%p239_p2), %v583_v3  ;;  %v290_v4 = vpack.c.bf16 (!%p239_p2), %v287_v1, %v286_v0  ;;  %v289_v5 = vld [vmem:[%s705_s1 + $0x18] sm:$0xff] (!%p239_p2)  ;;  %545 = vmatprep.mubr.msk.bf16.mxu0 (!%p239_p2), %vm584_vm0, %v583_v3  ;;  %p271_p3 = scmp.lt.s32.totalorder (!%p239_p2), %s521_s9, 3  ;;  %v347_v6 = vld [vmem:[%s707_s3] sm:$0xff] (!%p239_p2)  ;;  %v348_v7 = vld [vmem:[%s707_s3 + $0x8] sm:$0xff] (!%p239_p2)  ;;  %vm299_vm1 = vcmask (!%p239_p2), 261120  }
   0x7   : > { %549 = vmatprep.subr.bf16.mxu1 (!%p239_p2), %v583_v3  ;;  %v355_v8 = vpack.c.bf16 (!%p239_p2), %v348_v7, %v347_v6  ;;  %v349_v9 = vld [vmem:[%s707_s3 + $0x10] sm:$0xff] (!%p239_p2)  ;;  %v350_v10 = vld [vmem:[%s707_s3 + $0x18] sm:$0xff] (!%p239_p2)  ;;  %557 = vmatprep.mubr.msk.bf16.mxu1 (!%p239_p2), %vm584_vm0, %v583_v3  ;;  %v291_v11 = vpack.c.bf16 (!%p239_p2), %v289_v5, %v288_v2  ;;  %v351_v16 = vld [vmem:[%s707_s3 + $0x20] sm:$0xff] (!%p239_p2)  ;;  %vm366_vm2 = vcmask (!%p239_p2), 523264  }
   0x8   : > { %542 = vmatpush3.bf16.msra.mxu0 (!%p239_p2), %v290_v4  ;;  %v356_v12 = vpack.c.bf16 (!%p239_p2), %v350_v10, %v349_v9  ;;  %v352_v17 = vld [vmem:[%s707_s3 + $0x28] sm:$0xff] (!%p239_p2)  ;;  %v353_v19 = vld [vmem:[%s707_s3 + $0x30] sm:$0xff] (!%p239_p2)  ;;  %v354_v20 = vld [vmem:[%s707_s3 + $0x38] sm:$0xff] (!%p239_p2) }
   0x9   : > { %543 = vmatprep.subr.bf16.mxu0 (!%p239_p2), %v583_v3  ;;  %550 = vmatpush3.bf16.msra.mxu1 (!%p239_p2), %v355_v8  ;;  %v357_v18 = vpack.c.bf16 (!%p239_p2), %v352_v17, %v351_v16  ;;  %v358_v21 = vpack.c.bf16 (!%p239_p2), %v354_v20, %v353_v19  ;;  %v525_v22 = vld [vmem:[%s706_s2] ss:$0 sm:$0xff] (!%p239_p2) }
   0xa   : > { %551 = vmatprep.subr.bf16.mxu1 (!%p239_p2), %v583_v3  ;;  %v527_v32 = vld [vmem:[%s708_s4] ss:$0 sm:$0xff] (!%p239_p2) }
   0xb   : > { %v529_v60 = vld [vmem:[%s709_s5] ss:$0 sm:$0xff] (!%p239_p2) }
   0xc   : > { %544 = vmatpush3.bf16.msra.mxu0 (!%p239_p2), %v291_v11  ;;  %v530_v62 = vld [vmem:[%s710_s6] ss:$0 sm:$0xff] (!%p239_p2) }
   0xd   : > { %s713_s9 = smov (!%p271_p3, %s521_s9), 3  ;;  %552 = vmatpush3.bf16.msra.mxu1 %v356_v12 }
   0xe   : > { %s522_s20 = sshll.u32 %s713_s9, 3  ;;  %553 = vmatprep.subr.bf16.mxu1 %v583_v3 }
   0xf   : > { %s274_s23 = scalar_lea.vmem %s704_s0, %s522_s20  ;;  %s280_s22 = scalar_lea.vmem %s711_s7, %s522_s20 }
  0x10   : > { %v283_v13 = vld [vmem:[%s274_s23] sm:$0xff]  ;;  %v284_v14 = vld [vmem:[%s274_s23 + $0x8] sm:$0xff] }
  0x11   : > { %v285_v15 = vpack.c.bf16 %v284_v14, %v283_v13  ;;  %554 = vmatpush3.bf16.msra.mxu1 %v357_v18 }
  0x12   : > { %555 = vmatprep.subr.bf16.mxu1 %v583_v3 }
  0x13   : > { %546 = vmatmul.mubr.msk.bf16.vlgmr.msra.gmra.mrb[0].mxu0 %vm299_vm1, %v285_v15 }
  0x15   : > { %556 = vmatpush3.bf16.msra.mxu1 %v358_v21 }
  0xe6   : > { %v337_v23 = vpop.f32.mrb[0].mxu0 }
  0xe7   : > { %v338_v24 = vadd.f32 %v525_v22, %v337_v23  ;;  %v547_v25 = vpop.f32.mrb[1].mxu0 }
  0xe8   : > { %v340_v26 = vpop.f32.mrb[2].mxu0 }
  0xe9   : > { %v341_v27 = vadd.f32 %v525_v22, %v340_v26  ;;  %v548_v28 = vpop.f32.mrb[3].mxu0  ;;  %v344_v29 = vmax.f32 %v338_v24, 0.0 }
  0xeb   : > { %v345_v30 = vmax.f32 %v341_v27, 0.0 }
  0xed   : > { %v346_v31 = vpack.c.bf16 %v345_v30, %v344_v29 }
  0xef   : > { %558 = vmatmul.mubr.msk.bf16.vlgmr.msra.gmra.mrb[0].mxu1 %vm366_vm2, %v346_v31 }
 0x1c2   : > { %v404_v33 = vpop.f32.mrb[0].mxu1 }
 0x1c3   : > { %v405_v34 = vadd.f32 %v527_v32, %v404_v33  ;;  %v559_v35 = vpop.f32.mrb[1].mxu1 }
 0x1c4   : > { %v407_v36 = vpop.f32.mrb[2].mxu1 }
 0x1c5   : > { %v408_v37 = vadd.f32 %v527_v32, %v407_v36  ;;  %v560_v38 = vpop.f32.mrb[3].mxu1  ;;  %v411_v39 = vadd.f32 %v405_v34, %v283_v13 }
 0x1c7   : > { %v415_v40 = vsel %vm299_vm1, %v411_v39, 0.0  ;;  %v412_v41 = vadd.f32 %v408_v37, %v284_v14 }
 0x1c8   : > { %416 = vadd.xlane.f32.xlu0 %v415_v40 }
 0x1c9   : > { %v418_v42 = vsel %vm299_vm1, %v412_v41, 0.0 }
 0x1cc   : > { %419 = vadd.xlane.f32.xlu0 %v418_v42 }
 0x255   : > { %v417_v43 = vpop.xlane.xlu0 %416 }
 0x256   : > { %v422_v44 = vmul.f32 0.03125, %v417_v43 }
 0x258   : > { %v424_v45 = vsub.f32 %v411_v39, %v422_v44 }
 0x259   : > { %v420_v46 = vpop.xlane.xlu0 %419 }
 0x25a   : > { %v423_v47 = vmul.f32 0.03125, %v420_v46  ;;  %v426_v48 = vmul.f32 %v424_v45, %v424_v45 }
 0x25c   : > { %v425_v49 = vsub.f32 %v412_v41, %v423_v47  ;;  %v428_v50 = vsel %vm299_vm1, %v426_v48, 0.0 }
 0x25d   : > { %429 = vadd.xlane.f32.xlu1 %v428_v50 }
 0x25e   : > { %v427_v51 = vmul.f32 %v425_v49, %v425_v49 }
 0x260   : > { %v431_v52 = vsel %vm299_vm1, %v427_v51, 0.0 }
 0x261   : > { %432 = vadd.xlane.f32.xlu1 %v431_v52 }
 0x2ea   : > { %v430_v53 = vpop.xlane.xlu1 %429 }
 0x2eb   : > { %v434_v54 = vmul.f32 0.03125, %v430_v53 }
 0x2ed   : > { %v436_v55 = vadd.f32 1e-05, %v434_v54 }
 0x2ee   : > { %v433_v56 = vpop.xlane.xlu1 %432 }
 0x2ef   : > { %571 = vrsqrt.f32 %v436_v55  ;;  %v435_v57 = vmul.f32 0.03125, %v433_v56 }
 0x2f1   : > { %v437_v58 = vadd.f32 1e-05, %v435_v57 }
 0x2f3   : > { %573 = vrsqrt.f32 %v437_v58 }
 0x2f9   : > { %v572_v59 = vpop.eup %571 }
 0x2fa   : > { %v440_v61 = vmul.f32 %v572_v59, %v424_v45 }
 0x2fc   : > { %v448_v63 = vmul.f32 %v529_v60, %v440_v61 }
 0x2fd   : > { %v574_v0 = vpop.eup %573 }
 0x2fe   : > { %v456_v1 = vadd.f32 %v530_v62, %v448_v63  ;;  %v441_v2 = vmul.f32 %v574_v0, %v425_v49 }
 0x300   : > { %458 = vst.msk [vmem:[%s280_s22] sm:$0xff] %vm299_vm1, %v456_v1  ;;  %v449_v3 = vmul.f32 %v529_v60, %v441_v2 }
 0x302   : > { %v457_v4 = vadd.f32 %v530_v62, %v449_v3 }
 0x304   : > { %459 = vst.msk [vmem:[%s280_s22 + $0x8] sm:$0xff] %vm299_vm1, %v457_v4 }
 0x305 PF: > { %s17_s24 = sadd.s32 1, %s581_s24  }
 0x306   : > { %p14_p4 = scmp.ge.s32.totalorder %s17_s24, 4  }
 0x308   :  { %16 = sbr.rel (!%p14_p4) target bundleno = 1 (0x1), region = 78 }

// kernel: transformer_ae_forward.23
= control target key start
LH: loop header
LB: loop body
LE: loop exit
PB: predicated region body
PF: predicated region fallthrough
CT: control target
= control target key end

     0   :  { %s359_s12 = smov 0   ;;  %s391_s0 = inlined_call_operand.vmem [shape: f32[32,32], index: 0, kind: input, shape index: {}]   ;;  %s392_s1 = inlined_call_operand.vmem [shape: f32[32,4], index: 1, kind: input, shape index: {}]   ;;  %s393_s2 = inlined_call_operand.vmem [shape: f32[1,4], index: 2, kind: input, shape index: {}]   ;;  %s394_s3 = inlined_call_operand.vmem [shape: f32[32,4], index: 3, kind: output, shape index: {}]  }
   0x1 LB: > { %s295_s13 = sadd.s32 4294967295, %s335_s12   ;;  %p299_p0 = scmp.ge.s32.totalorder %s335_s12, 1  ;;  %s335_s12 = sphi %s359_s12, %s13_s12  }
   0x2   : > { %p138_p1 = scmp.lt.s32.totalorder %s335_s12, 3 }
   0x4   : > { %p139_p2 = pnand %p299_p0, %p138_p1 }
   0x5   : > { %v178_v0 = vld [vmem:[%s392_s1] sm:$0xff] (!%p139_p2)  ;;  %v179_v1 = vld [vmem:[%s392_s1 + $0x8] sm:$0xff] (!%p139_p2)  ;;  %v180_v2 = vld [vmem:[%s392_s1 + $0x10] sm:$0xff] (!%p139_p2)  ;;  %s300_s20 = sshll.u32 (!%p139_p2), %s295_s13, 1  ;;  %v337_v3 = vmov (!%p139_p2), 0.0   ;;  %vm338_vm0 = vmmov (!%p139_p2), 0  }
   0x6   : > { %142 = sbr.rel (%p139_p2) target bundleno = 236 (0xec), region = 32  ;;  %311 = vmatprep.subr.bf16.mxu0 (!%p139_p2), %v337_v3  ;;  %v182_v4 = vpack.c.bf16 (!%p139_p2), %v179_v1, %v178_v0  ;;  %v181_v5 = vld [vmem:[%s392_s1 + $0x18] sm:$0xff] (!%p139_p2)  ;;  %315 = vmatprep.mubr.msk.bf16.mxu0 (!%p139_p2), %vm338_vm0, %v337_v3  ;;  %p163_p3 = scmp.lt.s32.totalorder (!%p139_p2), %s300_s20, 3  ;;  %vm191_vm1 = vcmask (!%p139_p2), 261120   ;;  %v304_v10 = vld [vmem:[%s393_s2] ss:$0 sm:$0xff] (!%p139_p2) }
   0x7   : > { %v183_v6 = vpack.c.bf16 (!%p139_p2), %v181_v5, %v180_v2  ;;  %vm236_vm2 = vcmask (!%p139_p2), 31744  }
   0x8   : > { %312 = vmatpush3.bf16.msra.mxu0 (!%p139_p2), %v182_v4 }
   0x9   : > { %313 = vmatprep.subr.bf16.mxu0 (!%p139_p2), %v337_v3 }
   0xc   : > { %314 = vmatpush3.bf16.msra.mxu0 (!%p139_p2), %v183_v6 }
   0xd   : > { %s396_s20 = smov (!%p163_p3, %s300_s20), 3 }
   0xe   : > { %s301_s23 = sshll.u32 %s396_s20, 3 }
   0xf   : > { %s166_s26 = scalar_lea.vmem %s391_s0, %s301_s23  ;;  %s172_s4 = scalar_lea.vmem %s394_s3, %s301_s23 }
  0x10   : > { %v175_v7 = vld [vmem:[%s166_s26] sm:$0xff]  ;;  %v176_v8 = vld [vmem:[%s166_s26 + $0x8] sm:$0xff] }
  0x11   : > { %v177_v9 = vpack.c.bf16 %v176_v8, %v175_v7 }
  0x13   : > { %316 = vmatmul.mubr.msk.bf16.vlgmr.msra.gmra.mrb[0].mxu0 %vm191_vm1, %v177_v9 }
  0xe6   : > { %v229_v11 = vpop.f32.mrb[0].mxu0 }
  0xe7   : > { %v230_v12 = vadd.f32 %v304_v10, %v229_v11  ;;  %v317_v13 = vpop.f32.mrb[1].mxu0 }
  0xe8   : > { %v232_v14 = vpop.f32.mrb[2].mxu0 }
  0xe9   : > { %237 = vst.msk [vmem:[%s172_s4] sm:$0xff] %vm236_vm2, %v230_v12  ;;  %v233_v15 = vadd.f32 %v304_v10, %v232_v14  ;;  %v318_v16 = vpop.f32.mrb[3].mxu0 }
  0xeb   : > { %238 = vst.msk [vmem:[%s172_s4 + $0x8] sm:$0xff] %vm236_vm2, %v233_v15 }
  0xec PF: > { %s13_s12 = sadd.s32 1, %s335_s12  }
  0xed   : > { %p10_p4 = scmp.ge.s32.totalorder %s13_s12, 4  }
  0xef   :  { %12 = sbr.rel (!%p10_p4) target bundleno = 1 (0x1), region = 62 }

// kernel: transformer_ae_forward.18
= control target key start
LH: loop header
LB: loop body
LE: loop exit
PB: predicated region body
PF: predicated region fallthrough
CT: control target
= control target key end

     0   :  { %s1607_s13 = smov 0   ;;  %s1801_s0 = inlined_call_operand.vmem [shape: f32[32,32], index: 0, kind: input, shape index: {}]   ;;  %s1802_s1 = inlined_call_operand.vmem [shape: f32[32,32], index: 1, kind: input, shape index: {}]   ;;  %s1803_s2 = inlined_call_operand.vmem [shape: f32[32,32], index: 2, kind: input, shape index: {}]   ;;  %s1804_s3 = inlined_call_operand.vmem [shape: f32[1,32], index: 3, kind: input, shape index: {}]   ;;  %s1805_s4 = inlined_call_operand.vmem [shape: f32[32,64], index: 4, kind: input, shape index: {}]   ;;  %s1806_s5 = inlined_call_operand.vmem [shape: f32[1,64], index: 5, kind: input, shape index: {}]   ;;  %s1807_s6 = inlined_call_operand.vmem [shape: f32[32,32], index: 6, kind: input, shape index: {}]   ;;  %s1808_s7 = inlined_call_operand.vmem [shape: f32[1,32], index: 7, kind: input, shape index: {}]   ;;  %s1809_s8 = inlined_call_operand.vmem [shape: f32[1,32], index: 8, kind: input, shape index: {}]   ;;  %s1810_s9 = inlined_call_operand.vmem [shape: f32[1,32], index: 9, kind: input, shape index: {}]   ;;  %s1811_s10 = inlined_call_operand.vmem [shape: f32[32,32], index: 10, kind: output, shape index: {}]  }
   0x1 LB: > { %s1332_s14 = sadd.s32 4294967295, %s1541_s13   ;;  %p1336_p0 = scmp.ge.s32.totalorder %s1541_s13, 1  ;;  %s1541_s13 = sphi %s1607_s13, %s20_s13  }
   0x2   : > { %p324_p1 = scmp.lt.s32.totalorder %s1541_s13, 3 }
   0x4   : > { %p325_p2 = pnand %p1336_p0, %p324_p1 }
   0x5   : > { %v450_v0 = vld [vmem:[%s1805_s4] sm:$0xff] (!%p325_p2)  ;;  %v451_v1 = vld [vmem:[%s1805_s4 + $0x8] sm:$0xff] (!%p325_p2)  ;;  %v452_v2 = vld [vmem:[%s1805_s4 + $0x10] sm:$0xff] (!%p325_p2)  ;;  %s1337_s21 = sshll.u32 (!%p325_p2), %s1332_s14, 1  ;;  %v1543_v3 = vmov (!%p325_p2), 0.0   ;;  %vm1544_vm0 = vmmov (!%p325_p2), 0  }
   0x6   : > { %328 = sbr.rel (%p325_p2) target bundleno = 2942 (0xb7e), region = 60  ;;  %1402 = vmatprep.subr.bf16.mxu1 (!%p325_p2), %v1543_v3  ;;  %v454_v4 = vpack.c.bf16 (!%p325_p2), %v451_v1, %v450_v0  ;;  %1394 = vmatprep.subr.bf16.mxu0 (!%p325_p2), %v1543_v3  ;;  %v453_v5 = vld [vmem:[%s1805_s4 + $0x18] sm:$0xff] (!%p325_p2)  ;;  %v391_v6 = vld [vmem:[%s1803_s2] sm:$0xff] (!%p325_p2)  ;;  %v392_v7 = vld [vmem:[%s1803_s2 + $0x8] sm:$0xff] (!%p325_p2)  ;;  %p368_p3 = scmp.lt.s32.totalorder (!%p325_p2), %s1337_s21, 3  ;;  %vm404_vm1 = vcmask (!%p325_p2), 261120  }
   0x7   : > { %v395_v8 = vpack.c.bf16 (!%p325_p2), %v392_v7, %v391_v6  ;;  %1406 = vmatprep.mubr.msk.bf16.mxu1 (!%p325_p2), %vm1544_vm0, %v1543_v3  ;;  %v393_v9 = vld [vmem:[%s1803_s2 + $0x10] sm:$0xff] (!%p325_p2)  ;;  %v394_v10 = vld [vmem:[%s1803_s2 + $0x18] sm:$0xff] (!%p325_p2)  ;;  %1398 = vmatprep.mubr.msk.bf16.mxu0 (!%p325_p2), %vm1544_vm0, %v1543_v3  ;;  %v455_v11 = vpack.c.bf16 (!%p325_p2), %v453_v5, %v452_v2  ;;  %v1343_v19 = vld [vmem:[%s1804_s3] ss:$0 sm:$0xff] (!%p325_p2)  ;;  %vm513_vm2 = vcmask (!%p325_p2), 64512   ;;  %s1545_s24 = smov (!%p325_p2), 120  }
   0x8   : > { %1403 = vmatpush3.bf16.msra.mxu1 (!%p325_p2), %v454_v4  ;;  %v396_v12 = vpack.c.bf16 (!%p325_p2), %v394_v10, %v393_v9  ;;  %v1345_v20 = vld [vmem:[%s1806_s5] ss:$0 sm:$0xff] (!%p325_p2)  ;;  %vm563_vm3 = vcmask (!%p325_p2), 130048   ;;  %s1546_s25 = smov (!%p325_p2), 88   ;;  %s1547_s26 = smov (!%p325_p2), 96   ;;  %vm766_vm4 = vcmask (!%p325_p2), 1043456  }
   0x9   : > { %1404 = vmatprep.subr.bf16.mxu1 (!%p325_p2), %v1543_v3  ;;  %1395 = vmatpush3.bf16.msra.mxu0 (!%p325_p2), %v395_v8  ;;  %s1548_s27 = smov (!%p325_p2), 112   ;;  %s1549_s14 = smov (!%p325_p2), 80  }
   0xa   : > { %1396 = vmatprep.subr.bf16.mxu0 (!%p325_p2), %v1543_v3  ;;  %s1550_s15 = smov (!%p325_p2), 104   ;;  %s1551_s18 = smov (!%p325_p2), 72  }
   0xc   : > { %1405 = vmatpush3.bf16.msra.mxu1 (!%p325_p2), %v455_v11 }
   0xd   : > { %s1813_s21 = smov (!%p368_p3, %s1337_s21), 3  ;;  %1397 = vmatpush3.bf16.msra.mxu0 %v396_v12  ;;  %1416 = vmatprep.subr.bf16.mxu1 %v1543_v3 }
   0xe   : > { %s1646_s12 = sshll.u32 %s1813_s21, 3  ;;  %1410 = vmatprep.subr.bf16.mxu0 %v1543_v3 }
   0xf   : > { %s377_s16 = scalar_lea.vmem %s1802_s1, %s1646_s12  ;;  %s371_s19 = scalar_lea.vmem %s1801_s0, %s1646_s12 }
  0x10   : > { %v388_v13 = vld [vmem:[%s377_s16] sm:$0xff]  ;;  %v389_v14 = vld [vmem:[%s377_s16 + $0x8] sm:$0xff]  ;;  %s383_s29 = scalar_lea.vmem %s1811_s10, %s1646_s12 }
  0x11   : > { %v449_v15 = vpack.c.bf16 %v389_v14, %v388_v13  ;;  %v1657_v16 = vld [vmem:[%s371_s19] sm:$0xff]  ;;  %v1659_v17 = vld [vmem:[%s371_s19 + $0x8] sm:$0xff] }
  0x12   : > { %v390_v18 = vpack.c.bf16 %v1659_v17, %v1657_v16 }
  0x13   : > { %1407 = vmatmul.mubr.msk.bf16.vlgmr.msra.gmra.mrb[0].mxu1 %vm404_vm1, %v449_v15 }
  0x14   : > { %1399 = vmatmul.mubr.msk.bf16.vlgmr.msra.gmra.mrb[0].mxu0 %vm404_vm1, %v390_v18  ;;  %1418 = vmatprep.mubr.msk.bf16.mxu1 %vm1544_vm0, %v1543_v3 }
  0x15   : > { %1412 = vmatprep.mubr.msk.bf16.mxu0 %vm1544_vm0, %v1543_v3 }
  0xe6   : > { %v500_v21 = vpop.f32.mrb[0].mxu1 }
  0xe7   : > { %v1408_v22 = vpop.f32.mrb[1].mxu1  ;;  %v442_v23 = vpop.f32.mrb[0].mxu0  ;;  %v501_v27 = vadd.f32 %v1345_v20, %v500_v21 }
  0xe8   : > { %v503_v24 = vpop.f32.mrb[2].mxu1  ;;  %v443_v25 = vadd.f32 %v1343_v19, %v442_v23  ;;  %v1400_v26 = vpop.f32.mrb[1].mxu0 }
  0xe9   : > { %v504_v28 = vadd.f32 %v1345_v20, %v503_v24  ;;  %v1409_v29 = vpop.f32.mrb[3].mxu1  ;;  %v445_v30 = vpop.f32.mrb[2].mxu0 }
  0xea   : > { %v446_v31 = vadd.f32 %v1343_v19, %v445_v30  ;;  %v1401_v32 = vpop.f32.mrb[3].mxu0  ;;  %v507_v30 = vld [vmem:[%s1807_s6] sm:$0xff] }
  0xeb   : > { %v1677_v33 = vpack.c.bf16 %v504_v28, %v501_v27  ;;  %v508_v32 = vld [vmem:[%s1807_s6 + $0x8] sm:$0xff] }
  0xec   : > { %v1679_v34 = vpack.c.bf16 %v446_v31, %v443_v25  ;;  %v635_v31 = vpack.c.bf16 %v507_v30, %v507_v30 }
  0xed   : > { %640 = vrot.lane.b32.xlu0 %v1677_v33, %s1545_s24  ;;  %v518_v35 = vsel %vm513_vm2, %v1677_v33, 0 }
  0xee   : > { %1411 = vmatpush3.bf16.xpose.msra.mxu0 %v518_v35  ;;  %v815_v35 = vsel %vm766_vm4, %v635_v31, 0 }
  0xef   : > { %1422 = vmatprep.subr.bf16.mxu0 %v1543_v3 }
  0xf1   : > { %638 = vrot.lane.b32.xlu0 %v1679_v34, %s1545_s24 }
  0xf5   : > { %1413 = vmatmul.mubr.msk.bf16.vlgmr.msra.gmra.mrb[4].mxu0 %vm513_vm2, %v1679_v34 }
  0xf6   : > { %1424 = vmatprep.mubr.msk.bf16.mxu0 %vm1544_vm0, %v1543_v3 }
 0x15f   : > { %v641_v36 = vpop.permute.xlu0 %640 }
 0x160   : > { %v646_v37 = vsel %vm513_vm2, %v641_v36, 0  ;;  %v761_v36 = vpack.c.bf16 %v508_v32, %v508_v32 }
 0x161   : > { %1423 = vmatpush3.bf16.xpose.msra.mxu0 %v646_v37 }
 0x162   : > { %1434 = vmatprep.subr.bf16.mxu0 %v1543_v3  ;;  %v768_v37 = vsel %vm766_vm4, %v761_v36, 0 }
 0x163   : > { %v639_v38 = vpop.permute.xlu0 %638 }
 0x168   : > { %1425 = vmatmul.mubr.msk.bf16.vlgmr.msra.gmra.mrb[8].mxu0 %vm513_vm2, %v639_v38 }
 0x169   : > { %1436 = vmatprep.mubr.msk.bf16.mxu0 %vm1544_vm0, %v1543_v3  ;;  %1435 = vmatpush3.bf16.msra.mxu0 %v768_v37 }
 0x16a   : > { %1446 = vmatprep.subr.bf16.mxu0 %v1543_v3 }
 0x1c8   : > { %v554_v39 = vpop.f32.mrb[4].mxu0 }
 0x1c9   : > { %v561_v40 = vmul.f32 0.35355338, %v554_v39  ;;  %v1414_v41 = vpop.f32.mrb[5].mxu0 }
 0x1ca   : > { %v557_v42 = vpop.f32.mrb[6].mxu0 }
 0x1cb   : > { %v562_v43 = vmul.f32 0.35355338, %v557_v42  ;;  %v1415_v44 = vpop.f32.mrb[7].mxu0  ;;  %v564_v45 = vsel %vm563_vm3, %v561_v40, -inf }
 0x1cc   : > { %565 = vmax.xlane.f32.xlu1 %v564_v45 }
 0x1cd   : > { %v567_v46 = vsel %vm563_vm3, %v562_v43, -inf }
 0x1d0   : > { %568 = vmax.xlane.f32.xlu1 %v567_v46 }
 0x23b   : > { %v682_v47 = vpop.f32.mrb[8].mxu0 }
 0x23c   : > { %v689_v48 = vmul.f32 0.35355338, %v682_v47  ;;  %v1426_v49 = vpop.f32.mrb[9].mxu0 }
 0x23d   : > { %v685_v50 = vpop.f32.mrb[10].mxu0 }
 0x23e   : > { %v690_v51 = vmul.f32 0.35355338, %v685_v50  ;;  %v1427_v52 = vpop.f32.mrb[11].mxu0  ;;  %v691_v53 = vsel %vm563_vm3, %v689_v48, -inf }
 0x23f   : > { %692 = vmax.xlane.f32.xlu0 %v691_v53 }
 0x240   : > { %v694_v54 = vsel %vm563_vm3, %v690_v51, -inf }
 0x241   : > { %695 = vmax.xlane.f32.xlu1 %v694_v54 }
 0x255   : > { %714 = vrot.lane.b32.xlu0 %v1677_v33, %s1546_s25 }
 0x259   : > { %v566_v55 = vpop.xlane.xlu1 %565 }
 0x25a   : > { %v570_v56 = vsub.f32 %v561_v40, %v566_v55 }
 0x25c   : > { %v572_v57 = vmul.f32 1.442695, %v570_v56 }
 0x25d   : > { %v569_v58 = vpop.xlane.xlu1 %568 }
 0x25e   : > { %1499 = vpow2.f32 %v572_v57  ;;  %v571_v59 = vsub.f32 %v562_v43, %v569_v58 }
 0x260   : > { %v574_v60 = vmul.f32 1.442695, %v571_v59 }
 0x262   : > { %1501 = vpow2.f32 %v574_v60 }
 0x268   : > { %v1500_v61 = vpop.eup %1499 }
 0x269   : > { %v576_v62 = vsel %vm563_vm3, %v1500_v61, 0.0 }
 0x26a   : > { %577 = vadd.xlane.f32.xlu1 %v576_v62 }
 0x26c   : > { %v1502_v63 = vpop.eup %1501 }
 0x26d   : > { %v579_v0 = vsel %vm563_vm3, %v1502_v63, 0.0 }
 0x26e   : > { %580 = vadd.xlane.f32.xlu1 %v579_v0 }
 0x2cc   : > { %v693_v1 = vpop.xlane.xlu0 %692 }
 0x2cd   : > { %v697_v2 = vsub.f32 %v689_v48, %v693_v1 }
 0x2ce   : > { %v696_v4 = vpop.xlane.xlu1 %695 }
 0x2cf   : > { %v699_v5 = vmul.f32 1.442695, %v697_v2  ;;  %v698_v6 = vsub.f32 %v690_v51, %v696_v4 }
 0x2d0   : > { %v715_v24 = vpop.permute.xlu0 %714 }
 0x2d1   : > { %1503 = vpow2.f32 %v699_v5  ;;  %v701_v7 = vmul.f32 1.442695, %v698_v6 }
 0x2d3   : > { %1505 = vpow2.f32 %v701_v7 }
 0x2db   : > { %v1504_v8 = vpop.eup %1503 }
 0x2dc   : > { %v703_v9 = vsel %vm563_vm3, %v1504_v8, 0.0 }
 0x2dd   : > { %v1506_v10 = vpop.eup %1505  ;;  %704 = vadd.xlane.f32.xlu1 %v703_v9 }
 0x2de   : > { %v706_v11 = vsel %vm563_vm3, %v1506_v10, 0.0 }
 0x2e1   : > { %707 = vadd.xlane.f32.xlu1 %v706_v11 }
 0x2f2   : > { %588 = vrot.lane.b32.xlu1 %v1677_v33, %s1547_s26 }
 0x2f6   : > { %860 = vrot.lane.b32.xlu1 %v1677_v33, %s1548_s27 }
 0x2f7   : > { %v578_v12 = vpop.xlane.xlu1 %577 }
 0x2fa   : > { %858 = vrot.lane.b32.xlu1 %v1679_v34, %s1548_s27 }
 0x2fb   : > { %v581_v13 = vpop.xlane.xlu1 %580 }
 0x2fc   : > { %1507 = vrcp.f32 %v581_v13 }
 0x2fd   : > { %1509 = vrcp.f32 %v578_v12 }
 0x306   : > { %v1508_v15 = vpop.eup %1507 }
 0x307   : > { %v1510_v19 = vpop.eup %1509  ;;  %v585_v20 = vmul.f32 %v1508_v15, %v1502_v63 }
 0x308   : > { %v584_v21 = vmul.f32 %v1510_v19, %v1500_v61 }
 0x30a   : > { %v586_v23 = vpack.c.bf16 %v585_v20, %v584_v21 }
 0x36a   : > { %v705_v14 = vpop.xlane.xlu1 %704 }
 0x36b   : > { %1511 = vrcp.f32 %v705_v14 }
 0x36e   : > { %v708_v18 = vpop.xlane.xlu1 %707 }
 0x36f   : > { %1513 = vrcp.f32 %v708_v18 }
 0x372   : > { %v589_v22 = vpop.permute.xlu1 %588 }
 0x373   : > { %1417 = vmatpush3.bf16.msra.mxu1 %v589_v22 }
 0x374   : > { %1428 = vmatprep.subr.bf16.mxu1 %v1543_v3 }
 0x375   : > { %v1512_v25 = vpop.eup %1511 }
 0x376   : > { %1419 = vmatmul.mubr.msk.bf16.vlgmr.msra.gmra.mrb[4].mxu1 %vm563_vm3, %v586_v23  ;;  %v711_v27 = vmul.f32 %v1512_v25, %v1504_v8  ;;  %v861_v45 = vpop.permute.xlu1 %860 }
 0x377   : > { %1429 = vmatpush3.bf16.msra.mxu1 %v715_v24  ;;  %1430 = vmatprep.mubr.msk.bf16.mxu1 %vm1544_vm0, %v1543_v3  ;;  %v866_v49 = vsel %vm513_vm2, %v861_v45, 0 }
 0x378   : > { %1440 = vmatprep.subr.bf16.mxu1 %v1543_v3 }
 0x379   : > { %v1514_v26 = vpop.eup %1513 }
 0x37a   : > { %v712_v28 = vmul.f32 %v1514_v26, %v1506_v10  ;;  %v859_v50 = vpop.permute.xlu1 %858 }
 0x37c   : > { %v713_v29 = vpack.c.bf16 %v712_v28, %v711_v27  ;;  %v509_v28 = vld [vmem:[%s1807_s6 + $0x10] sm:$0xff] }
 0x37e   : > { %1431 = vmatmul.mubr.msk.bf16.vlgmr.msra.gmra.mrb[8].mxu1 %vm563_vm3, %v713_v29  ;;  %v981_v29 = vpack.c.bf16 %v509_v28, %v509_v28 }
 0x37f   : > { %1442 = vmatprep.mubr.msk.bf16.mxu1 %vm1544_vm0, %v1543_v3  ;;  %1441 = vmatpush3.bf16.msra.mxu1 %v815_v35 }
 0x380   : > { %1452 = vmatprep.subr.bf16.mxu1 %v1543_v3  ;;  %v987_v30 = vsel %vm766_vm4, %v981_v29, 0 }
 0x449   : > { %v628_v38 = vpop.f32.mrb[4].mxu1 }
 0x44a   : > { %v1420_v39 = vpop.f32.mrb[5].mxu1 }
 0x44b   : > { %v631_v40 = vpop.f32.mrb[6].mxu1 }
 0x44c   : > { %v636_v41 = vpack.c.bf16 %v631_v40, %v628_v38  ;;  %v1421_v42 = vpop.f32.mrb[7].mxu1 }
 0x44e   : > { %1443 = vmatmul.mubr.msk.bf16.vlgmr.msra.gmra.mrb[12].mxu1 %vm513_vm2, %v636_v41 }
 0x44f   : > { %1454 = vmatprep.mubr.msk.bf16.mxu1 %vm1544_vm0, %v1543_v3 }
 0x451   : > { %v754_v43 = vpop.f32.mrb[8].mxu1 }
 0x452   : > { %v1432_v44 = vpop.f32.mrb[9].mxu1 }
 0x453   : > { %v757_v46 = vpop.f32.mrb[10].mxu1 }
 0x454   : > { %v762_v47 = vpack.c.bf16 %v757_v46, %v754_v43  ;;  %v1433_v48 = vpop.f32.mrb[11].mxu1 }
 0x456   : > { %1437 = vmatmul.mubr.msk.bf16.vlgmr.msra.gmra.mrb[12].mxu0 %vm513_vm2, %v762_v47 }
 0x457   : > { %1447 = vmatpush3.bf16.xpose.msra.mxu0 %v866_v49  ;;  %1448 = vmatprep.mubr.msk.bf16.mxu0 %vm1544_vm0, %v1543_v3 }
 0x458   : > { %1458 = vmatprep.subr.bf16.mxu0 %v1543_v3 }
 0x45e   : > { %1449 = vmatmul.mubr.msk.bf16.vlgmr.msra.gmra.mrb[16].mxu0 %vm513_vm2, %v859_v50 }
 0x45f   : > { %1460 = vmatprep.mubr.msk.bf16.mxu0 %vm1544_vm0, %v1543_v3  ;;  %1459 = vmatpush3.bf16.msra.mxu0 %v987_v30 }
 0x460   : > { %1470 = vmatprep.subr.bf16.mxu0 %v1543_v3 }
 0x521   : > { %v851_v51 = vpop.f32.mrb[12].mxu1 }
 0x522   : > { %v1444_v52 = vpop.f32.mrb[13].mxu1 }
 0x523   : > { %v854_v53 = vpop.f32.mrb[14].mxu1 }
 0x524   : > { %v1445_v54 = vpop.f32.mrb[15].mxu1 }
 0x529   : > { %v804_v55 = vpop.f32.mrb[12].mxu0 }
 0x52a   : > { %v1736_v56 = vadd.f32 %v851_v51, %v804_v55  ;;  %v1438_v57 = vpop.f32.mrb[13].mxu0 }
 0x52b   : > { %v807_v58 = vpop.f32.mrb[14].mxu0 }
 0x52c   : > { %v1738_v59 = vadd.f32 %v854_v53, %v807_v58  ;;  %v1439_v60 = vpop.f32.mrb[15].mxu0 }
 0x531   : > { %v902_v61 = vpop.f32.mrb[16].mxu0 }
 0x532   : > { %v909_v62 = vmul.f32 0.35355338, %v902_v61  ;;  %v1450_v63 = vpop.f32.mrb[17].mxu0 }
 0x533   : > { %v905_v0 = vpop.f32.mrb[18].mxu0 }
 0x534   : > { %v910_v1 = vmul.f32 0.35355338, %v905_v0  ;;  %v1451_v2 = vpop.f32.mrb[19].mxu0  ;;  %v911_v4 = vsel %vm563_vm3, %v909_v62, -inf }
 0x535   : > { %912 = vmax.xlane.f32.xlu1 %v911_v4 }
 0x536   : > { %v914_v5 = vsel %vm563_vm3, %v910_v1, -inf }
 0x537   : > { %915 = vmax.xlane.f32.xlu0 %v914_v5 }
 0x5c2   : > { %v913_v6 = vpop.xlane.xlu1 %912 }
 0x5c3   : > { %v917_v7 = vsub.f32 %v909_v62, %v913_v6 }
 0x5c4   : > { %v916_v8 = vpop.xlane.xlu0 %915 }
 0x5c5   : > { %v919_v9 = vmul.f32 1.442695, %v917_v7  ;;  %v918_v10 = vsub.f32 %v910_v1, %v916_v8 }
 0x5c7   : > { %1515 = vpow2.f32 %v919_v9  ;;  %v921_v11 = vmul.f32 1.442695, %v918_v10 }
 0x5c9   : > { %1517 = vpow2.f32 %v921_v11 }
 0x5d1   : > { %v1516_v12 = vpop.eup %1515 }
 0x5d2   : > { %v923_v13 = vsel %vm563_vm3, %v1516_v12, 0.0 }
 0x5d3   : > { %v1518_v14 = vpop.eup %1517  ;;  %924 = vadd.xlane.f32.xlu1 %v923_v13 }
 0x5d4   : > { %v926_v15 = vsel %vm563_vm3, %v1518_v14, 0.0 }
 0x5d5   : > { %927 = vadd.xlane.f32.xlu0 %v926_v15 }
 0x5e4   : > { %934 = vrot.lane.b32.xlu1 %v1677_v33, %s1549_s14 }
 0x5e8   : > { %1032 = vrot.lane.b32.xlu1 %v1679_v34, %s1550_s15 }
 0x5eb   : > { %1034 = vrot.lane.b32.xlu0 %v1677_v33, %s1550_s15 }
 0x660   : > { %v925_v18 = vpop.xlane.xlu1 %924 }
 0x661   : > { %1519 = vrcp.f32 %v925_v18 }
 0x662   : > { %v928_v19 = vpop.xlane.xlu0 %927 }
 0x663   : > { %1521 = vrcp.f32 %v928_v19 }
 0x664   : > { %v935_v20 = vpop.permute.xlu1 %934 }
 0x665   : > { %1453 = vmatpush3.bf16.msra.mxu1 %v935_v20 }
 0x666   : > { %1464 = vmatprep.subr.bf16.mxu1 %v1543_v3  ;;  %v1035_v25 = vpop.permute.xlu0 %1034 }
 0x667   : > { %v1040_v27 = vsel %vm513_vm2, %v1035_v25, 0 }
 0x668   : > { %v1033_v34 = vpop.permute.xlu1 %1032 }
 0x66b   : > { %v1520_v21 = vpop.eup %1519 }
 0x66c   : > { %v931_v23 = vmul.f32 %v1520_v21, %v1516_v12 }
 0x66d   : > { %v1522_v22 = vpop.eup %1521 }
 0x66e   : > { %v932_v24 = vmul.f32 %v1522_v22, %v1518_v14  ;;  %v1359_v14 = vld [vmem:[%s1808_s7] ss:$0 sm:$0xff] }
 0x670   : > { %v933_v26 = vpack.c.bf16 %v932_v24, %v931_v23 }
 0x672   : > { %1455 = vmatmul.mubr.msk.bf16.vlgmr.msra.gmra.mrb[16].mxu1 %vm563_vm3, %v933_v26 }
 0x673   : > { %1465 = vmatpush3.bf16.xpose.msra.mxu1 %v1040_v27  ;;  %1466 = vmatprep.mubr.msk.bf16.mxu1 %vm1544_vm0, %v1543_v3 }
 0x674   : > { %1476 = vmatprep.subr.bf16.mxu1 %v1543_v3 }
 0x67a   : > { %1467 = vmatmul.mubr.msk.bf16.vlgmr.msra.gmra.mrb[20].mxu1 %vm513_vm2, %v1033_v34 }
 0x67b   : > { %1478 = vmatprep.mubr.msk.bf16.mxu1 %vm1544_vm0, %v1543_v3 }
 0x745   : > { %v974_v31 = vpop.f32.mrb[16].mxu1 }
 0x746   : > { %v1456_v32 = vpop.f32.mrb[17].mxu1 }
 0x747   : > { %v977_v35 = vpop.f32.mrb[18].mxu1 }
 0x748   : > { %v982_v36 = vpack.c.bf16 %v977_v35, %v974_v31  ;;  %v1457_v37 = vpop.f32.mrb[19].mxu1 }
 0x74a   : > { %1461 = vmatmul.mubr.msk.bf16.vlgmr.msra.gmra.mrb[20].mxu0 %vm513_vm2, %v982_v36 }
 0x74b   : > { %1472 = vmatprep.mubr.msk.bf16.mxu0 %vm1544_vm0, %v1543_v3 }
 0x74d   : > { %v1076_v38 = vpop.f32.mrb[20].mxu1 }
 0x74e   : > { %v1083_v39 = vmul.f32 0.35355338, %v1076_v38  ;;  %v1468_v40 = vpop.f32.mrb[21].mxu1 }
 0x74f   : > { %v1079_v41 = vpop.f32.mrb[22].mxu1 }
 0x750   : > { %v1084_v42 = vmul.f32 0.35355338, %v1079_v41  ;;  %v1469_v43 = vpop.f32.mrb[23].mxu1  ;;  %v1085_v44 = vsel %vm563_vm3, %v1083_v39, -inf }
 0x751   : > { %1086 = vmax.xlane.f32.xlu1 %v1085_v44  ;;  %v1360_v44 = vld [vmem:[%s1809_s8] ss:$0 sm:$0xff] }
 0x752   : > { %v1088_v45 = vsel %vm563_vm3, %v1084_v42, -inf }
 0x753   : > { %1089 = vmax.xlane.f32.xlu0 %v1088_v45 }
 0x7de   : > { %v1087_v46 = vpop.xlane.xlu1 %1086 }
 0x7df   : > { %v1091_v47 = vsub.f32 %v1083_v39, %v1087_v46  ;;  %v1361_v46 = vld [vmem:[%s1810_s9] ss:$0 sm:$0xff] }
 0x7e0   : > { %v1090_v48 = vpop.xlane.xlu0 %1089 }
 0x7e1   : > { %v1093_v49 = vmul.f32 1.442695, %v1091_v47  ;;  %v1092_v50 = vsub.f32 %v1084_v42, %v1090_v48 }
 0x7e3   : > { %1523 = vpow2.f32 %v1093_v49  ;;  %v1095_v51 = vmul.f32 1.442695, %v1092_v50 }
 0x7e5   : > { %1525 = vpow2.f32 %v1095_v51 }
 0x7ed   : > { %v1524_v3 = vpop.eup %1523 }
 0x7ee   : > { %v1097_v52 = vsel %vm563_vm3, %v1524_v3, 0.0 }
 0x7ef   : > { %v1526_v53 = vpop.eup %1525  ;;  %1098 = vadd.xlane.f32.xlu0 %v1097_v52 }
 0x7f0   : > { %v1100_v54 = vsel %vm563_vm3, %v1526_v53, 0.0 }
 0x7f1   : > { %1101 = vadd.xlane.f32.xlu1 %v1100_v54 }
 0x805   : > { %1108 = vrot.lane.b32.xlu0 %v1677_v33, %s1551_s18  ;;  %v510_v33 = vld [vmem:[%s1807_s6 + $0x18] sm:$0xff] }
 0x81d   : > { %v1023_v55 = vpop.f32.mrb[20].mxu0 }
 0x81e   : > { %v1030_v57 = vadd.f32 %v1023_v55, %v1736_v56  ;;  %v1462_v58 = vpop.f32.mrb[21].mxu0  ;;  %v1155_v56 = vpack.c.bf16 %v510_v33, %v510_v33 }
 0x81f   : > { %v1026_v60 = vpop.f32.mrb[22].mxu0 }
 0x820   : > { %v1031_v61 = vadd.f32 %v1026_v60, %v1738_v59  ;;  %v1463_v62 = vpop.f32.mrb[23].mxu0  ;;  %v1161_v59 = vsel %vm766_vm4, %v1155_v56, 0 }
 0x821   : > { %1477 = vmatpush3.bf16.msra.mxu1 %v1161_v59 }
 0x87c   : > { %v1099_v63 = vpop.xlane.xlu0 %1098 }
 0x87d   : > { %1527 = vrcp.f32 %v1099_v63 }
 0x87e   : > { %v1102_v0 = vpop.xlane.xlu1 %1101 }
 0x87f   : > { %1529 = vrcp.f32 %v1102_v0 }
 0x880   : > { %v1109_v1 = vpop.permute.xlu0 %1108 }
 0x881   : > { %1471 = vmatpush3.bf16.msra.mxu0 %v1109_v1 }
 0x887   : > { %v1528_v2 = vpop.eup %1527 }
 0x888   : > { %v1105_v5 = vmul.f32 %v1528_v2, %v1524_v3 }
 0x889   : > { %v1530_v4 = vpop.eup %1529 }
 0x88a   : > { %v1106_v6 = vmul.f32 %v1530_v4, %v1526_v53 }
 0x88c   : > { %v1107_v7 = vpack.c.bf16 %v1106_v6, %v1105_v5 }
 0x88e   : > { %1473 = vmatmul.mubr.msk.bf16.vlgmr.msra.gmra.mrb[24].mxu0 %vm563_vm3, %v1107_v7 }
 0x961   : > { %v1148_v8 = vpop.f32.mrb[24].mxu0 }
 0x962   : > { %v1474_v9 = vpop.f32.mrb[25].mxu0 }
 0x963   : > { %v1151_v10 = vpop.f32.mrb[26].mxu0 }
 0x964   : > { %v1156_v11 = vpack.c.bf16 %v1151_v10, %v1148_v8  ;;  %v1475_v12 = vpop.f32.mrb[27].mxu0 }
 0x966   : > { %1479 = vmatmul.mubr.msk.bf16.vlgmr.msra.gmra.mrb[24].mxu1 %vm513_vm2, %v1156_v11 }
 0xa39   : > { %v1197_v13 = vpop.f32.mrb[24].mxu1 }
 0xa3a   : > { %v1204_v15 = vadd.f32 %v1197_v13, %v1030_v57  ;;  %v1480_v18 = vpop.f32.mrb[25].mxu1 }
 0xa3b   : > { %v1200_v19 = vpop.f32.mrb[26].mxu1 }
 0xa3c   : > { %v1213_v20 = vadd.f32 %v1359_v14, %v1204_v15  ;;  %v1205_v21 = vadd.f32 %v1200_v19, %v1031_v61  ;;  %v1481_v22 = vpop.f32.mrb[27].mxu1 }
 0xa3e   : > { %v1214_v23 = vadd.f32 %v1359_v14, %v1205_v21  ;;  %v1215_v24 = vadd.f32 %v1213_v20, %v1657_v16 }
 0xa40   : > { %v1219_v25 = vsel %vm404_vm1, %v1215_v24, 0.0  ;;  %v1216_v26 = vadd.f32 %v1214_v23, %v1659_v17 }
 0xa41   : > { %1220 = vadd.xlane.f32.xlu1 %v1219_v25 }
 0xa42   : > { %v1222_v27 = vsel %vm404_vm1, %v1216_v26, 0.0 }
 0xa45   : > { %1223 = vadd.xlane.f32.xlu1 %v1222_v27 }
 0xace   : > { %v1221_v34 = vpop.xlane.xlu1 %1220 }
 0xacf   : > { %v1226_v28 = vmul.f32 0.03125, %v1221_v34 }
 0xad1   : > { %v1228_v29 = vsub.f32 %v1215_v24, %v1226_v28 }
 0xad2   : > { %v1224_v30 = vpop.xlane.xlu1 %1223 }
 0xad3   : > { %v1227_v31 = vmul.f32 0.03125, %v1224_v30  ;;  %v1230_v32 = vmul.f32 %v1228_v29, %v1228_v29 }
 0xad5   : > { %v1229_v35 = vsub.f32 %v1216_v26, %v1227_v31  ;;  %v1232_v36 = vsel %vm404_vm1, %v1230_v32, 0.0 }
 0xad6   : > { %1233 = vadd.xlane.f32.xlu1 %v1232_v36 }
 0xad7   : > { %v1231_v37 = vmul.f32 %v1229_v35, %v1229_v35 }
 0xad9   : > { %v1235_v16 = vsel %vm404_vm1, %v1231_v37, 0.0 }
 0xada   : > { %1236 = vadd.xlane.f32.xlu1 %v1235_v16 }
 0xb63   : > { %v1234_v17 = vpop.xlane.xlu1 %1233 }
 0xb64   : > { %v1238_v38 = vmul.f32 0.03125, %v1234_v17 }
 0xb66   : > { %v1240_v39 = vadd.f32 1e-05, %v1238_v38 }
 0xb67   : > { %v1237_v40 = vpop.xlane.xlu1 %1236 }
 0xb68   : > { %1531 = vrsqrt.f32 %v1240_v39  ;;  %v1239_v41 = vmul.f32 0.03125, %v1237_v40 }
 0xb6a   : > { %v1241_v42 = vadd.f32 1e-05, %v1239_v41 }
 0xb6c   : > { %1533 = vrsqrt.f32 %v1241_v42 }
 0xb72   : > { %v1532_v43 = vpop.eup %1531 }
 0xb73   : > { %v1244_v45 = vmul.f32 %v1532_v43, %v1228_v29 }
 0xb75   : > { %v1252_v47 = vmul.f32 %v1360_v44, %v1244_v45 }
 0xb76   : > { %v1534_v48 = vpop.eup %1533 }
 0xb77   : > { %v1260_v49 = vadd.f32 %v1361_v46, %v1252_v47  ;;  %v1245_v50 = vmul.f32 %v1534_v48, %v1229_v35 }
 0xb79   : > { %1262 = vst.msk [vmem:[%s383_s29] sm:$0xff] %vm404_vm1, %v1260_v49  ;;  %v1253_v51 = vmul.f32 %v1360_v44, %v1245_v50 }
 0xb7b   : > { %v1261_v3 = vadd.f32 %v1361_v46, %v1253_v51 }
 0xb7d   : > { %1263 = vst.msk [vmem:[%s383_s29 + $0x8] sm:$0xff] %vm404_vm1, %v1261_v3 }
 0xb7e PF: > { %s20_s13 = sadd.s32 1, %s1541_s13  }
 0xb7f   : > { %p17_p4 = scmp.ge.s32.totalorder %s20_s13, 4  }
 0xb81   :  { %19 = sbr.rel (!%p17_p4) target bundleno = 1 (0x1), region = 93 }

</bundles_post_ra>
